<compile_context>
chip_gen: v5e
topology: v5e:2x2
jax: 0.10.0
libtpu: 0.0.40
codegen_flags: <defaults>
</compile_context>

<pallas_src>
import numpy as np
import jax
import jax.numpy as jnp
from jax.experimental import pallas as pl
from jax.experimental.pallas import tpu as pltpu  # noqa: F401  (TPU backend)

# ----------------------------- config (small, synthetic) --------------------
DIM_X = 16        # number of features
DIM_Z = 4         # latent dim
N_BATCHES = 2     # experimental batches (one-hot size)
N_WINDOWS = 6     # time windows -> n_windows+1 boundaries
H_ENC_Z = 32      # d_hidden_encoder_z = [32]
H_ENC_L = 32      # d_hidden_encoder_l = [32]
H_DEC_T = 16      # d_hidden_decoder_t = [16]
MC = 4            # mc_samples
N = 8             # batch size
T_SCALE = 1.0     # FixedScaleNormalIntervalsSL fixed scale
DIN = DIM_X + N_BATCHES                      # 18

# ---------------- packed-layout constants ------------------------------------
ROW_W = 32                                   # per-row input slab width
C_X = 0                                      # x features        cols [0:16)
C_B = DIM_X                                  # one-hot batch     cols [16:18)
C_LP_LOC = 24                                # LogNormal prior loc
C_LP_LOGS = 25                               # log(prior scale)          (hoisted)
C_LP_I2V = 26                                # 1/(2*prior_scale^2)       (hoisted)
C_WLO = 27                                   # window lower bound (clamped)
C_WHI = 28                                   # window upper bound (clamped)
C_ONE = 31                                   # constant 1.0 bias feature

O_HZ = 0                                     # pre1 cols: enc_z hidden   [0:32)
O_HL = H_ENC_Z                               #            enc_l hidden   [32:64)
O_BX = H_ENC_Z + H_ENC_L                     #            bias_x = b@wx_b+bx [64:80)
W1_OUT = O_BX + DIM_X                        # 80

W2_IN = H_ENC_Z + H_ENC_L                    # 64
W2_OUT = 16                                  # [z_loc(4)|z_scl(4)|l_loc|l_scl|pad]

D1_OUT = DIM_X + H_DEC_T                     # 32: [x logits(16) | t hidden(16)]
D2_OUT = 8                                   # col 0 = t_loc

B_ENC2 = 0                                   # bias slab cols [0:16)  -> b_enc2
B_DEC1 = 16                                  #           cols [16:48) -> b_dec1
B_DEC2 = 48                                  #           cols [48:56) -> b_dec2
BIAS_W = 64

EPS_W = 8                                    # packed eps: [eps_z(4)|eps_l(1)|pad]
OUT_W = 128                                  # lane-dense output (col0=ll, col1=kl)

INV_SQRT2_SCALE = float(1.0 / (T_SCALE * np.sqrt(2.0)))


# ----------------------------- in-kernel helpers -----------------------------
def _softplus(x):
    # stable softplus from exp/log/abs/max only (clean Mosaic lowering)
    return jnp.maximum(x, 0.0) + jnp.log(1.0 + jnp.exp(-jnp.abs(x)))


def _erf(x):
    # Abramowitz & Stegun 7.1.26 rational approximation (|err| < 1.5e-7).
    a1, a2, a3, a4, a5 = 0.254829592, -0.284496736, 1.421413741, -1.453152027, 1.061405429
    p = 0.3275911
    sgn = jnp.where(x >= 0.0, 1.0, -1.0)
    ax = jnp.abs(x)
    t = 1.0 / (1.0 + p * ax)
    poly = ((((a5 * t + a4) * t + a3) * t + a2) * t + a1) * t
    return sgn * (1.0 - poly * jnp.exp(-ax * ax))


# ----------------------------- the fused kernel -------------------------------
def tempo_kernel(row_ref, eps_ref, w1_ref, w2_ref, wd1_ref, wd2_ref, bias_ref,
                 out_ref):
    n = row_ref.shape[0]
    mc = eps_ref.shape[0] // n

    row = row_ref[...]                                    # (n, 32)
    bias = bias_ref[...]                                  # (1, 64)

    # --- fused encoder first layer + decoder batch-bias (biases via ones col) ---
    pre1 = jnp.dot(row, w1_ref[...], preferred_element_type=jnp.float32)   # (n, 80)
    h = jnp.maximum(pre1[:, O_HZ:O_BX], 0.0)              # [relu(hz) | relu(hl)]
    bias_x = pre1[:, O_BX:W1_OUT]                         # b_onehot @ wx_b + bx

    # --- fused (block-diagonal) encoder heads: z_loc|z_scl|l_loc|l_scl ---
    out2 = (jnp.dot(h, w2_ref[...], preferred_element_type=jnp.float32)
            + bias[:, B_ENC2:B_ENC2 + W2_OUT])
    z_loc = out2[:, 0:DIM_Z]
    z_scl = _softplus(out2[:, DIM_Z:2 * DIM_Z]) + 1e-4
    l_loc = out2[:, 2 * DIM_Z:2 * DIM_Z + 1]
    l_scl = _softplus(out2[:, 2 * DIM_Z + 1:2 * DIM_Z + 2]) + 1e-4

    # --- KL terms (prior stats hoisted into the row slab) ---
    kl_z = jnp.sum(-jnp.log(z_scl) + 0.5 * (z_scl * z_scl + z_loc * z_loc) - 0.5,
                   axis=-1, keepdims=True)
    lp_loc = row[:, C_LP_LOC:C_LP_LOC + 1]
    log_lp_scl = row[:, C_LP_LOGS:C_LP_LOGS + 1]
    inv_2var = row[:, C_LP_I2V:C_LP_I2V + 1]
    kl_l = (log_lp_scl - jnp.log(l_scl)
            + (l_scl * l_scl + (l_loc - lp_loc) ** 2) * inv_2var - 0.5)
    kl = kl_z + kl_l                                      # (n, 1)

    # --- reparameterized sampling, flattened to mc*n rows (static unroll) ---
    eps = eps_ref[...]                                    # (mc*n, 8)
    z_parts, l_parts = [], []
    for s in range(mc):
        es = eps[s * n:(s + 1) * n, :]
        z_parts.append(z_loc + z_scl * es[:, 0:DIM_Z])
        l_parts.append(jnp.exp(l_loc + l_scl * es[:, DIM_Z:DIM_Z + 1]))
    z_all = jnp.concatenate(z_parts, axis=0)              # (mc*n, DIM_Z)
    l_all = jnp.concatenate(l_parts, axis=0)              # (mc*n, 1)

    # MC-invariant per-row data, tiled along rows (8-aligned concat)
    x = row[:, C_X:C_X + DIM_X]
    win_lo = row[:, C_WLO:C_WLO + 1]
    win_hi = row[:, C_WHI:C_WHI + 1]
    x_rep = jnp.concatenate([x] * mc, axis=0)
    bias_x_rep = jnp.concatenate([bias_x] * mc, axis=0)
    lo_rep = jnp.concatenate([win_lo] * mc, axis=0)
    hi_rep = jnp.concatenate([win_hi] * mc, axis=0)

    # --- fused decoder first layer: x logits | t hidden ---
    dec1 = (jnp.dot(z_all, wd1_ref[...], preferred_element_type=jnp.float32)
            + bias[:, B_DEC1:B_DEC1 + D1_OUT])
    logits = dec1[:, 0:DIM_X] + bias_x_rep
    ht = jnp.maximum(dec1[:, DIM_X:D1_OUT], 0.0)
    dec2 = (jnp.dot(ht, wd2_ref[...], preferred_element_type=jnp.float32)
            + bias[:, B_DEC2:B_DEC2 + D2_OUT])
    t_loc = dec2[:, 0:1]                                  # (mc*n, 1)

    # --- ScaledBernoulli: rho = softmax(logits), p = 1 - exp(-l*rho) ---
    m = jnp.max(logits, axis=-1, keepdims=True)
    e = jnp.exp(logits - m)
    rho = e * pl.reciprocal(jnp.sum(e, axis=-1, keepdims=True), approx=True)
    lam = l_all * rho
    log_p = jnp.log(jnp.maximum(1.0 - jnp.exp(-lam), 1e-6))   # log p
    # log(1-p) = -lam exactly (stable form)
    log_px = jnp.sum(x_rep * log_p - (1.0 - x_rep) * lam, axis=-1, keepdims=True)

    # --- fixed-scale Normal interval likelihood of the time window ---
    a_hi = jnp.clip((hi_rep - t_loc) * INV_SQRT2_SCALE, -6.0, 6.0)
    a_lo = jnp.clip((lo_rep - t_loc) * INV_SQRT2_SCALE, -6.0, 6.0)
    log_pt = jnp.log(jnp.maximum(0.5 * (_erf(a_hi) - _erf(a_lo)), 1e-12))

    ll = log_px + log_pt                                  # (mc*n, 1)

    # mean over MC samples (static 8-aligned slices)
    ll_mean = ll[0:n, :]
    for s in range(1, mc):
        ll_mean = ll_mean + ll[s * n:(s + 1) * n, :]
    ll_mean = ll_mean * (1.0 / mc)

    # lane-dense packed output: col 0 = log-lik, col 1 = kl, rest zero
    out_ref[...] = jnp.concatenate(
        [ll_mean, kl, jnp.zeros((n, OUT_W - 2), jnp.float32)], axis=-1)


# ----------------------------- parameters ------------------------------------
def _linear(key, fan_in, fan_out):
    w = (jax.random.normal(key, (fan_in, fan_out), jnp.float32)
         / np.sqrt(float(fan_in))).astype(jnp.float32)
    b = jnp.zeros((1, fan_out), jnp.float32)
    return w, b


def init_params(key):
    ks = jax.random.split(key, 10)
    p = {}
    p['wz1'], p['bz1'] = _linear(ks[0], DIN, H_ENC_Z)
    p['wz_loc'], p['bz_loc'] = _linear(ks[1], H_ENC_Z, DIM_Z)
    p['wz_scl'], p['bz_scl'] = _linear(ks[2], H_ENC_Z, DIM_Z)
    p['wl1'], p['bl1'] = _linear(ks[3], DIN, H_ENC_L)
    p['wl_loc'], p['bl_loc'] = _linear(ks[4], H_ENC_L, 1)
    p['wl_scl'], p['bl_scl'] = _linear(ks[5], H_ENC_L, 1)
    # decoder_sl (d_hidden_decoder_x is None -> input = dim_z + n_batches)
    p['wx_z'], _ = _linear(ks[6], DIM_Z, DIM_X)
    p['wx_b'], p['bx'] = _linear(ks[7], N_BATCHES, DIM_X)
    # decoder_t: LinearLayers([dim_z, H_DEC_T]) + FixedScaleNormalIntervalsSL
    p['wt1'], p['bt1'] = _linear(ks[8], DIM_Z, H_DEC_T)
    p['wt_loc'], p['bt_loc'] = _linear(ks[9], H_DEC_T, 1)
    # time-window parameters (as in __init__)
    delta = 2.0 / (N_WINDOWS - 2)
    p['interval_1'] = jnp.array([-1.0], jnp.float32)
    p['deltas'] = delta * jnp.ones((N_WINDOWS - 2,), jnp.float32)
    # library-size priors per experimental batch
    p['l_locs'] = jnp.array([[2.0], [2.5]], jnp.float32)
    p['l_scales'] = jnp.array([[0.5], [0.75]], jnp.float32)
    return p


def pack_params(p):
    """Fuse all small Linear layers into a few lane/sublane-aligned slabs."""
    f = lambda a: np.asarray(a, dtype=np.float32)

    # first layer: enc_in(=row_in cols 0:18) -> [hz(32) | hl(32) | bias_x(16)]
    # biases folded via the constant-1 feature at row_in col 31.
    w_enc1 = np.zeros((ROW_W, W1_OUT), np.float32)
    w_enc1[0:DIN, O_HZ:O_HZ + H_ENC_Z] = f(p['wz1'])
    w_enc1[0:DIN, O_HL:O_HL + H_ENC_L] = f(p['wl1'])
    w_enc1[C_B:C_B + N_BATCHES, O_BX:W1_OUT] = f(p['wx_b'])
    w_enc1[C_ONE, O_HZ:O_HZ + H_ENC_Z] = f(p['bz1'])[0]
    w_enc1[C_ONE, O_HL:O_HL + H_ENC_L] = f(p['bl1'])[0]
    w_enc1[C_ONE, O_BX:W1_OUT] = f(p['bx'])[0]

    # block-diagonal encoder heads: [hz|hl] -> [z_loc|z_scl|l_loc|l_scl|pad]
    w_enc2 = np.zeros((W2_IN, W2_OUT), np.float32)
    w_enc2[0:H_ENC_Z, 0:DIM_Z] = f(p['wz_loc'])
    w_enc2[0:H_ENC_Z, DIM_Z:2 * DIM_Z] = f(p['wz_scl'])
    w_enc2[H_ENC_Z:W2_IN, 2 * DIM_Z:2 * DIM_Z + 1] = f(p['wl_loc'])
    w_enc2[H_ENC_Z:W2_IN, 2 * DIM_Z + 1:2 * DIM_Z + 2] = f(p['wl_scl'])

    # decoder first layer: z -> [x logits | t hidden]
    w_dec1 = np.zeros((DIM_Z, D1_OUT), np.float32)
    w_dec1[:, 0:DIM_X] = f(p['wx_z'])
    w_dec1[:, DIM_X:D1_OUT] = f(p['wt1'])

    # decoder_t head: ht -> t_loc (col 0)
    w_dec2 = np.zeros((H_DEC_T, D2_OUT), np.float32)
    w_dec2[:, 0:1] = f(p['wt_loc'])

    # one bias slab: [b_enc2(16) | b_dec1(32) | b_dec2(8) | pad]
    bias = np.zeros((1, BIAS_W), np.float32)
    bias[0, 0:DIM_Z] = f(p['bz_loc'])[0]
    bias[0, DIM_Z:2 * DIM_Z] = f(p['bz_scl'])[0]
    bias[0, 2 * DIM_Z:2 * DIM_Z + 1] = f(p['bl_loc'])[0]
    bias[0, 2 * DIM_Z + 1:2 * DIM_Z + 2] = f(p['bl_scl'])[0]
    bias[0, B_DEC1 + DIM_X:B_DEC1 + D1_OUT] = f(p['bt1'])[0]    # bt1 (bx already in w_enc1)
    bias[0, B_DEC2:B_DEC2 + 1] = f(p['bt_loc'])[0]

    packed = {
        'w_enc1': jnp.asarray(w_enc1), 'w_enc2': jnp.asarray(w_enc2),
        'w_dec1': jnp.asarray(w_dec1), 'w_dec2': jnp.asarray(w_dec2),
        'bias': jnp.asarray(bias),
        'interval_1': p['interval_1'], 'deltas': p['deltas'],
        'l_locs': p['l_locs'], 'l_scales': p['l_scales'],
    }
    return packed


# ----------------------------- forward (thin glue + one fused kernel) ---------
def tempo_forward(packed, X, key):
    n = X.shape[0]
    x = X[:, :DIM_X]
    b = X[:, DIM_X].astype(jnp.int32)
    w = X[:, DIM_X + 1].astype(jnp.int32)
    b_onehot = jax.nn.one_hot(b, N_BATCHES, dtype=jnp.float32)

    # LogNormal prior stats per row (hoisted: log-scale and 1/(2*scale^2))
    lp_loc = packed['l_locs'][b, :]
    lp_scl = packed['l_scales'][b, :]
    log_lp_scl = jnp.log(lp_scl)
    inv_2var = 1.0 / (2.0 * lp_scl * lp_scl)

    # create_windows: boundaries = [-inf, i1, i1 + cumsum(deltas), +inf]
    boundaries = jnp.concatenate([
        jnp.array([-jnp.inf], jnp.float32),
        packed['interval_1'],
        packed['interval_1'] + jnp.cumsum(packed['deltas']),
        jnp.array([jnp.inf], jnp.float32)])
    win_lo = jnp.clip(boundaries[w][:, None], -1e4, 1e4)   # finite clamp; kernel
    win_hi = jnp.clip(boundaries[w + 1][:, None], -1e4, 1e4)  # also clips erf arg

    # lane-dense per-row input slab (N, 32)
    row_in = jnp.concatenate([
        x, b_onehot,
        jnp.zeros((n, C_LP_LOC - DIN), jnp.float32),
        lp_loc, log_lp_scl, inv_2var, win_lo, win_hi,
        jnp.zeros((n, C_ONE - (C_WHI + 1)), jnp.float32),
        jnp.ones((n, 1), jnp.float32)], axis=-1)

    # reparameterization noise, packed to (MC*N, 8)
    kz, klk = jax.random.split(key)
    eps_z = jax.random.normal(kz, (MC, n, DIM_Z), jnp.float32)
    eps_l = jax.random.normal(klk, (MC, n, 1), jnp.float32)
    eps = jnp.concatenate(
        [eps_z, eps_l, jnp.zeros((MC, n, EPS_W - DIM_Z - 1), jnp.float32)],
        axis=-1).reshape(MC * n, EPS_W)

    out = pl.pallas_call(
        tempo_kernel,
        out_shape=jax.ShapeDtypeStruct((n, OUT_W), jnp.float32),
    )(row_in, eps, packed['w_enc1'], packed['w_enc2'],
      packed['w_dec1'], packed['w_dec2'], packed['bias'])

    x_log_lik = out[:, 0]
    kl = out[:, 1]
    return x_log_lik, kl


# ----------------------------- main ------------------------------------------
if __name__ == "__main__":
    key = jax.random.PRNGKey(0)
    pkey, xkey, bkey, wkey, skey = jax.random.split(key, 5)

    params = init_params(pkey)
    packed = pack_params(params)

    x = jax.random.bernoulli(xkey, 0.3, (N, DIM_X)).astype(jnp.float32)
    b = jax.random.randint(bkey, (N,), 0, N_BATCHES)
    w = jax.random.randint(wkey, (N,), 0, N_WINDOWS)
    X = jnp.concatenate(
        [x, b[:, None].astype(jnp.float32), w[:, None].astype(jnp.float32)], axis=-1)

    fwd = jax.jit(tempo_forward)
    x_log_lik, kl = fwd(packed, X, skey)
    jax.block_until_ready((x_log_lik, kl))

    assert x_log_lik.shape == (N,), x_log_lik.shape
    assert kl.shape == (N,), kl.shape
    assert not bool(jnp.isnan(x_log_lik).any()), "log-lik is nan"
    assert not bool(jnp.isnan(kl).any()), "KL divergence is nan!"

    print("KERNEL_OK")
</pallas_src>

<mosaic_0001>
module attributes {stable_mosaic.version = 11 : i64} {
  func.func @tempo_kernel(%arg0: memref<8x32xf32, #tpu.memory_space<vmem>>, %arg1: memref<32x8xf32, #tpu.memory_space<vmem>>, %arg2: memref<32x80xf32, #tpu.memory_space<vmem>>, %arg3: memref<64x16xf32, #tpu.memory_space<vmem>>, %arg4: memref<4x32xf32, #tpu.memory_space<vmem>>, %arg5: memref<16x8xf32, #tpu.memory_space<vmem>>, %arg6: memref<1x64xf32, #tpu.memory_space<vmem>>, %arg7: memref<8x128xf32, #tpu.memory_space<vmem>>) attributes {dimension_semantics = [], scalar_prefetch = 0 : i64, scratch_operands = 0 : i64, tpu.core_type = #tpu.core_type<tc>} {
    %c0 = arith.constant 0 : index
    %c0_0 = arith.constant 0 : index
    %0 = vector.load %arg0[%c0, %c0_0] : memref<8x32xf32, #tpu.memory_space<vmem>>, vector<8x32xf32>
    %c0_1 = arith.constant 0 : index
    %c0_2 = arith.constant 0 : index
    %1 = vector.load %arg6[%c0_1, %c0_2] : memref<1x64xf32, #tpu.memory_space<vmem>>, vector<1x64xf32>
    %c0_3 = arith.constant 0 : index
    %c0_4 = arith.constant 0 : index
    %2 = vector.load %arg2[%c0_3, %c0_4] : memref<32x80xf32, #tpu.memory_space<vmem>>, vector<32x80xf32>
    %cst = arith.constant dense<0.000000e+00> : vector<8x80xf32>
    %3 = tpu.matmul %0, %2, %cst {dimension_numbers = #tpu.dot_dimension_numbers<[1], [0], [0], [1], [0, 0, 1, 1], [], []>} : vector<8x32xf32>, vector<32x80xf32>, vector<8x80xf32> -> vector<8x80xf32>
    %4 = vector.extract_strided_slice %3 {offsets = [0, 0], sizes = [8, 64], strides = [1, 1]} : vector<8x80xf32> to vector<8x64xf32>
    %cst_5 = arith.constant 0.000000e+00 : f32
    %5 = vector.broadcast %cst_5 : f32 to vector<8x64xf32>
    %6 = arith.maximumf %4, %5 : vector<8x64xf32>
    %7 = vector.extract_strided_slice %3 {offsets = [0, 64], sizes = [8, 16], strides = [1, 1]} : vector<8x80xf32> to vector<8x16xf32>
    %c0_6 = arith.constant 0 : index
    %c0_7 = arith.constant 0 : index
    %8 = vector.load %arg3[%c0_6, %c0_7] : memref<64x16xf32, #tpu.memory_space<vmem>>, vector<64x16xf32>
    %cst_8 = arith.constant dense<0.000000e+00> : vector<8x16xf32>
    %9 = tpu.matmul %6, %8, %cst_8 {dimension_numbers = #tpu.dot_dimension_numbers<[1], [0], [0], [1], [0, 0, 1, 1], [], []>} : vector<8x64xf32>, vector<64x16xf32>, vector<8x16xf32> -> vector<8x16xf32>
    %10 = vector.extract_strided_slice %1 {offsets = [0, 0], sizes = [1, 16], strides = [1, 1]} : vector<1x64xf32> to vector<1x16xf32>
    %11 = vector.broadcast %10 : vector<1x16xf32> to vector<8x16xf32>
    %12 = arith.addf %9, %11 : vector<8x16xf32>
    %13 = vector.extract_strided_slice %12 {offsets = [0, 0], sizes = [8, 4], strides = [1, 1]} : vector<8x16xf32> to vector<8x4xf32>
    %14 = vector.extract_strided_slice %12 {offsets = [0, 4], sizes = [8, 4], strides = [1, 1]} : vector<8x16xf32> to vector<8x4xf32>
    %cst_9 = arith.constant 0.000000e+00 : f32
    %15 = vector.broadcast %cst_9 : f32 to vector<8x4xf32>
    %16 = arith.maximumf %14, %15 : vector<8x4xf32>
    %17 = math.absf %14 : vector<8x4xf32>
    %cst_10 = arith.constant 0.000000e+00 : f32
    %18 = vector.broadcast %cst_10 : f32 to vector<8x4xf32>
    %19 = arith.subf %18, %17 : vector<8x4xf32>
    %20 = math.exp %19 : vector<8x4xf32>
    %cst_11 = arith.constant 1.000000e+00 : f32
    %21 = vector.broadcast %cst_11 : f32 to vector<8x4xf32>
    %22 = arith.addf %21, %20 : vector<8x4xf32>
    %23 = math.log %22 : vector<8x4xf32>
    %24 = arith.addf %16, %23 : vector<8x4xf32>
    %cst_12 = arith.constant 9.99999974E-5 : f32
    %25 = vector.broadcast %cst_12 : f32 to vector<8x4xf32>
    %26 = arith.addf %24, %25 : vector<8x4xf32>
    %27 = vector.extract_strided_slice %12 {offsets = [0, 8], sizes = [8, 1], strides = [1, 1]} : vector<8x16xf32> to vector<8x1xf32>
    %28 = vector.extract_strided_slice %12 {offsets = [0, 9], sizes = [8, 1], strides = [1, 1]} : vector<8x16xf32> to vector<8x1xf32>
    %cst_13 = arith.constant 0.000000e+00 : f32
    %29 = vector.broadcast %cst_13 : f32 to vector<8x1xf32>
    %30 = arith.maximumf %28, %29 : vector<8x1xf32>
    %31 = math.absf %28 : vector<8x1xf32>
    %cst_14 = arith.constant 0.000000e+00 : f32
    %32 = vector.broadcast %cst_14 : f32 to vector<8x1xf32>
    %33 = arith.subf %32, %31 : vector<8x1xf32>
    %34 = math.exp %33 : vector<8x1xf32>
    %cst_15 = arith.constant 1.000000e+00 : f32
    %35 = vector.broadcast %cst_15 : f32 to vector<8x1xf32>
    %36 = arith.addf %35, %34 : vector<8x1xf32>
    %37 = math.log %36 : vector<8x1xf32>
    %38 = arith.addf %30, %37 : vector<8x1xf32>
    %cst_16 = arith.constant 9.99999974E-5 : f32
    %39 = vector.broadcast %cst_16 : f32 to vector<8x1xf32>
    %40 = arith.addf %38, %39 : vector<8x1xf32>
    %41 = math.log %26 : vector<8x4xf32>
    %cst_17 = arith.constant 0.000000e+00 : f32
    %42 = vector.broadcast %cst_17 : f32 to vector<8x4xf32>
    %43 = arith.subf %42, %41 : vector<8x4xf32>
    %44 = arith.mulf %26, %26 : vector<8x4xf32>
    %45 = arith.mulf %13, %13 : vector<8x4xf32>
    %46 = arith.addf %44, %45 : vector<8x4xf32>
    %cst_18 = arith.constant 5.000000e-01 : f32
    %47 = vector.broadcast %cst_18 : f32 to vector<8x4xf32>
    %48 = arith.mulf %47, %46 : vector<8x4xf32>
    %49 = arith.addf %43, %48 : vector<8x4xf32>
    %cst_19 = arith.constant 5.000000e-01 : f32
    %50 = vector.broadcast %cst_19 : f32 to vector<8x4xf32>
    %51 = arith.subf %49, %50 : vector<8x4xf32>
    %cst_20 = arith.constant dense<0.000000e+00> : vector<8xf32>
    %52 = vector.multi_reduction <add>, %51, %cst_20 [1] : vector<8x4xf32> to vector<8xf32>
    %53 = vector.shape_cast %52 : vector<8xf32> to vector<8x1xf32>
    %54 = vector.extract_strided_slice %0 {offsets = [0, 24], sizes = [8, 1], strides = [1, 1]} : vector<8x32xf32> to vector<8x1xf32>
    %55 = vector.extract_strided_slice %0 {offsets = [0, 25], sizes = [8, 1], strides = [1, 1]} : vector<8x32xf32> to vector<8x1xf32>
    %56 = vector.extract_strided_slice %0 {offsets = [0, 26], sizes = [8, 1], strides = [1, 1]} : vector<8x32xf32> to vector<8x1xf32>
    %57 = math.log %40 : vector<8x1xf32>
    %58 = arith.subf %55, %57 : vector<8x1xf32>
    %59 = arith.mulf %40, %40 : vector<8x1xf32>
    %60 = arith.subf %27, %54 : vector<8x1xf32>
    %61 = arith.mulf %60, %60 : vector<8x1xf32>
    %62 = arith.addf %59, %61 : vector<8x1xf32>
    %63 = arith.mulf %62, %56 : vector<8x1xf32>
    %64 = arith.addf %58, %63 : vector<8x1xf32>
    %cst_21 = arith.constant 5.000000e-01 : f32
    %65 = vector.broadcast %cst_21 : f32 to vector<8x1xf32>
    %66 = arith.subf %64, %65 : vector<8x1xf32>
    %67 = arith.addf %53, %66 : vector<8x1xf32>
    %c0_22 = arith.constant 0 : index
    %c0_23 = arith.constant 0 : index
    %68 = vector.load %arg1[%c0_22, %c0_23] : memref<32x8xf32, #tpu.memory_space<vmem>>, vector<32x8xf32>
    %69 = vector.extract_strided_slice %68 {offsets = [0, 0], sizes = [8, 8], strides = [1, 1]} : vector<32x8xf32> to vector<8x8xf32>
    %70 = vector.extract_strided_slice %69 {offsets = [0, 0], sizes = [8, 4], strides = [1, 1]} : vector<8x8xf32> to vector<8x4xf32>
    %71 = arith.mulf %26, %70 : vector<8x4xf32>
    %72 = arith.addf %13, %71 : vector<8x4xf32>
    %73 = vector.extract_strided_slice %69 {offsets = [0, 4], sizes = [8, 1], strides = [1, 1]} : vector<8x8xf32> to vector<8x1xf32>
    %74 = arith.mulf %40, %73 : vector<8x1xf32>
    %75 = arith.addf %27, %74 : vector<8x1xf32>
    %76 = math.exp %75 : vector<8x1xf32>
    %77 = vector.extract_strided_slice %68 {offsets = [8, 0], sizes = [8, 8], strides = [1, 1]} : vector<32x8xf32> to vector<8x8xf32>
    %78 = vector.extract_strided_slice %77 {offsets = [0, 0], sizes = [8, 4], strides = [1, 1]} : vector<8x8xf32> to vector<8x4xf32>
    %79 = arith.mulf %26, %78 : vector<8x4xf32>
    %80 = arith.addf %13, %79 : vector<8x4xf32>
    %81 = vector.extract_strided_slice %77 {offsets = [0, 4], sizes = [8, 1], strides = [1, 1]} : vector<8x8xf32> to vector<8x1xf32>
    %82 = arith.mulf %40, %81 : vector<8x1xf32>
    %83 = arith.addf %27, %82 : vector<8x1xf32>
    %84 = math.exp %83 : vector<8x1xf32>
    %85 = vector.extract_strided_slice %68 {offsets = [16, 0], sizes = [8, 8], strides = [1, 1]} : vector<32x8xf32> to vector<8x8xf32>
    %86 = vector.extract_strided_slice %85 {offsets = [0, 0], sizes = [8, 4], strides = [1, 1]} : vector<8x8xf32> to vector<8x4xf32>
    %87 = arith.mulf %26, %86 : vector<8x4xf32>
    %88 = arith.addf %13, %87 : vector<8x4xf32>
    %89 = vector.extract_strided_slice %85 {offsets = [0, 4], sizes = [8, 1], strides = [1, 1]} : vector<8x8xf32> to vector<8x1xf32>
    %90 = arith.mulf %40, %89 : vector<8x1xf32>
    %91 = arith.addf %27, %90 : vector<8x1xf32>
    %92 = math.exp %91 : vector<8x1xf32>
    %93 = vector.extract_strided_slice %68 {offsets = [24, 0], sizes = [8, 8], strides = [1, 1]} : vector<32x8xf32> to vector<8x8xf32>
    %94 = vector.extract_strided_slice %93 {offsets = [0, 0], sizes = [8, 4], strides = [1, 1]} : vector<8x8xf32> to vector<8x4xf32>
    %95 = arith.mulf %26, %94 : vector<8x4xf32>
    %96 = arith.addf %13, %95 : vector<8x4xf32>
    %97 = vector.extract_strided_slice %93 {offsets = [0, 4], sizes = [8, 1], strides = [1, 1]} : vector<8x8xf32> to vector<8x1xf32>
    %98 = arith.mulf %40, %97 : vector<8x1xf32>
    %99 = arith.addf %27, %98 : vector<8x1xf32>
    %100 = math.exp %99 : vector<8x1xf32>
    %101 = tpu.concatenate %72, %80, %88, %96 in 0 : vector<8x4xf32>, vector<8x4xf32>, vector<8x4xf32>, vector<8x4xf32> -> vector<32x4xf32>
    %102 = tpu.concatenate %76, %84, %92, %100 in 0 : vector<8x1xf32>, vector<8x1xf32>, vector<8x1xf32>, vector<8x1xf32> -> vector<32x1xf32>
    %103 = vector.extract_strided_slice %0 {offsets = [0, 0], sizes = [8, 16], strides = [1, 1]} : vector<8x32xf32> to vector<8x16xf32>
    %104 = vector.extract_strided_slice %0 {offsets = [0, 27], sizes = [8, 1], strides = [1, 1]} : vector<8x32xf32> to vector<8x1xf32>
    %105 = vector.extract_strided_slice %0 {offsets = [0, 28], sizes = [8, 1], strides = [1, 1]} : vector<8x32xf32> to vector<8x1xf32>
    %106 = tpu.concatenate %103, %103, %103, %103 in 0 : vector<8x16xf32>, vector<8x16xf32>, vector<8x16xf32>, vector<8x16xf32> -> vector<32x16xf32>
    %107 = tpu.concatenate %7, %7, %7, %7 in 0 : vector<8x16xf32>, vector<8x16xf32>, vector<8x16xf32>, vector<8x16xf32> -> vector<32x16xf32>
    %108 = tpu.concatenate %104, %104, %104, %104 in 0 : vector<8x1xf32>, vector<8x1xf32>, vector<8x1xf32>, vector<8x1xf32> -> vector<32x1xf32>
    %109 = tpu.concatenate %105, %105, %105, %105 in 0 : vector<8x1xf32>, vector<8x1xf32>, vector<8x1xf32>, vector<8x1xf32> -> vector<32x1xf32>
    %c0_24 = arith.constant 0 : index
    %c0_25 = arith.constant 0 : index
    %110 = vector.load %arg4[%c0_24, %c0_25] : memref<4x32xf32, #tpu.memory_space<vmem>>, vector<4x32xf32>
    %cst_26 = arith.constant dense<0.000000e+00> : vector<32x32xf32>
    %111 = tpu.matmul %101, %110, %cst_26 {dimension_numbers = #tpu.dot_dimension_numbers<[1], [0], [0], [1], [0, 0, 1, 1], [], []>} : vector<32x4xf32>, vector<4x32xf32>, vector<32x32xf32> -> vector<32x32xf32>
    %112 = vector.extract_strided_slice %1 {offsets = [0, 16], sizes = [1, 32], strides = [1, 1]} : vector<1x64xf32> to vector<1x32xf32>
    %113 = vector.broadcast %112 : vector<1x32xf32> to vector<32x32xf32>
    %114 = arith.addf %111, %113 : vector<32x32xf32>
    %115 = vector.extract_strided_slice %114 {offsets = [0, 0], sizes = [32, 16], strides = [1, 1]} : vector<32x32xf32> to vector<32x16xf32>
    %116 = arith.addf %115, %107 : vector<32x16xf32>
    %117 = vector.extract_strided_slice %114 {offsets = [0, 16], sizes = [32, 16], strides = [1, 1]} : vector<32x32xf32> to vector<32x16xf32>
    %cst_27 = arith.constant 0.000000e+00 : f32
    %118 = vector.broadcast %cst_27 : f32 to vector<32x16xf32>
    %119 = arith.maximumf %117, %118 : vector<32x16xf32>
    %c0_28 = arith.constant 0 : index
    %c0_29 = arith.constant 0 : index
    %120 = vector.load %arg5[%c0_28, %c0_29] : memref<16x8xf32, #tpu.memory_space<vmem>>, vector<16x8xf32>
    %cst_30 = arith.constant dense<0.000000e+00> : vector<32x8xf32>
    %121 = tpu.matmul %119, %120, %cst_30 {dimension_numbers = #tpu.dot_dimension_numbers<[1], [0], [0], [1], [0, 0, 1, 1], [], []>} : vector<32x16xf32>, vector<16x8xf32>, vector<32x8xf32> -> vector<32x8xf32>
    %122 = vector.extract_strided_slice %1 {offsets = [0, 48], sizes = [1, 8], strides = [1, 1]} : vector<1x64xf32> to vector<1x8xf32>
    %123 = vector.broadcast %122 : vector<1x8xf32> to vector<32x8xf32>
    %124 = arith.addf %121, %123 : vector<32x8xf32>
    %125 = vector.extract_strided_slice %124 {offsets = [0, 0], sizes = [32, 1], strides = [1, 1]} : vector<32x8xf32> to vector<32x1xf32>
    %cst_31 = arith.constant dense<0xFF800000> : vector<32xf32>
    %126 = vector.multi_reduction <maximumf>, %116, %cst_31 [1] : vector<32x16xf32> to vector<32xf32>
    %127 = vector.shape_cast %126 : vector<32xf32> to vector<32x1xf32>
    %128 = vector.broadcast %127 : vector<32x1xf32> to vector<32x16xf32>
    %129 = arith.subf %116, %128 : vector<32x16xf32>
    %130 = math.exp %129 : vector<32x16xf32>
    %cst_32 = arith.constant dense<0.000000e+00> : vector<32xf32>
    %131 = vector.multi_reduction <add>, %130, %cst_32 [1] : vector<32x16xf32> to vector<32xf32>
    %132 = vector.shape_cast %131 : vector<32xf32> to vector<32x1xf32>
    %133 = tpu.reciprocal %132 {approx = true} : vector<32x1xf32> -> vector<32x1xf32>
    %134 = vector.broadcast %133 : vector<32x1xf32> to vector<32x16xf32>
    %135 = arith.mulf %130, %134 : vector<32x16xf32>
    %136 = vector.broadcast %102 : vector<32x1xf32> to vector<32x16xf32>
    %137 = arith.mulf %136, %135 : vector<32x16xf32>
    %cst_33 = arith.constant 0.000000e+00 : f32
    %138 = vector.broadcast %cst_33 : f32 to vector<32x16xf32>
    %139 = arith.subf %138, %137 : vector<32x16xf32>
    %140 = math.exp %139 : vector<32x16xf32>
    %cst_34 = arith.constant 1.000000e+00 : f32
    %141 = vector.broadcast %cst_34 : f32 to vector<32x16xf32>
    %142 = arith.subf %141, %140 : vector<32x16xf32>
    %cst_35 = arith.constant 9.99999997E-7 : f32
    %143 = vector.broadcast %cst_35 : f32 to vector<32x16xf32>
    %144 = arith.maximumf %142, %143 : vector<32x16xf32>
    %145 = math.log %144 : vector<32x16xf32>
    %146 = arith.mulf %106, %145 : vector<32x16xf32>
    %cst_36 = arith.constant 1.000000e+00 : f32
    %147 = vector.broadcast %cst_36 : f32 to vector<32x16xf32>
    %148 = arith.subf %147, %106 : vector<32x16xf32>
    %149 = arith.mulf %148, %137 : vector<32x16xf32>
    %150 = arith.subf %146, %149 : vector<32x16xf32>
    %cst_37 = arith.constant dense<0.000000e+00> : vector<32xf32>
    %151 = vector.multi_reduction <add>, %150, %cst_37 [1] : vector<32x16xf32> to vector<32xf32>
    %152 = vector.shape_cast %151 : vector<32xf32> to vector<32x1xf32>
    %153 = arith.subf %109, %125 : vector<32x1xf32>
    %cst_38 = arith.constant 0.707106769 : f32
    %154 = vector.broadcast %cst_38 : f32 to vector<32x1xf32>
    %155 = arith.mulf %153, %154 : vector<32x1xf32>
    %cst_39 = arith.constant -6.000000e+00 : f32
    %cst_40 = arith.constant 6.000000e+00 : f32
    %156 = vector.broadcast %cst_39 : f32 to vector<32x1xf32>
    %157 = arith.maximumf %156, %155 : vector<32x1xf32>
    %158 = vector.broadcast %cst_40 : f32 to vector<32x1xf32>
    %159 = arith.minimumf %158, %157 : vector<32x1xf32>
    %160 = arith.subf %108, %125 : vector<32x1xf32>
    %cst_41 = arith.constant 0.707106769 : f32
    %161 = vector.broadcast %cst_41 : f32 to vector<32x1xf32>
    %162 = arith.mulf %160, %161 : vector<32x1xf32>
    %cst_42 = arith.constant -6.000000e+00 : f32
    %cst_43 = arith.constant 6.000000e+00 : f32
    %163 = vector.broadcast %cst_42 : f32 to vector<32x1xf32>
    %164 = arith.maximumf %163, %162 : vector<32x1xf32>
    %165 = vector.broadcast %cst_43 : f32 to vector<32x1xf32>
    %166 = arith.minimumf %165, %164 : vector<32x1xf32>
    %cst_44 = arith.constant 0.000000e+00 : f32
    %167 = vector.broadcast %cst_44 : f32 to vector<32x1xf32>
    %168 = arith.cmpf oge, %159, %167 : vector<32x1xf32>
    %cst_45 = arith.constant 1.000000e+00 : f32
    %cst_46 = arith.constant -1.000000e+00 : f32
    %169 = vector.broadcast %cst_45 : f32 to vector<32x1xf32>
    %170 = vector.broadcast %cst_46 : f32 to vector<32x1xf32>
    %171 = arith.select %168, %169, %170 : vector<32x1xi1>, vector<32x1xf32>
    %172 = math.absf %159 : vector<32x1xf32>
    %cst_47 = arith.constant 0.327591091 : f32
    %173 = vector.broadcast %cst_47 : f32 to vector<32x1xf32>
    %174 = arith.mulf %173, %172 : vector<32x1xf32>
    %cst_48 = arith.constant 1.000000e+00 : f32
    %175 = vector.broadcast %cst_48 : f32 to vector<32x1xf32>
    %176 = arith.addf %175, %174 : vector<32x1xf32>
    %cst_49 = arith.constant 1.000000e+00 : f32
    %177 = vector.broadcast %cst_49 : f32 to vector<32x1xf32>
    %178 = arith.divf %177, %176 : vector<32x1xf32>
    %cst_50 = arith.constant 1.06140542 : f32
    %179 = vector.broadcast %cst_50 : f32 to vector<32x1xf32>
    %180 = arith.mulf %179, %178 : vector<32x1xf32>
    %cst_51 = arith.constant -1.45315206 : f32
    %181 = vector.broadcast %cst_51 : f32 to vector<32x1xf32>
    %182 = arith.addf %180, %181 : vector<32x1xf32>
    %183 = arith.mulf %182, %178 : vector<32x1xf32>
    %cst_52 = arith.constant 1.42141378 : f32
    %184 = vector.broadcast %cst_52 : f32 to vector<32x1xf32>
    %185 = arith.addf %183, %184 : vector<32x1xf32>
    %186 = arith.mulf %185, %178 : vector<32x1xf32>
    %cst_53 = arith.constant -0.284496725 : f32
    %187 = vector.broadcast %cst_53 : f32 to vector<32x1xf32>
    %188 = arith.addf %186, %187 : vector<32x1xf32>
    %189 = arith.mulf %188, %178 : vector<32x1xf32>
    %cst_54 = arith.constant 0.254829586 : f32
    %190 = vector.broadcast %cst_54 : f32 to vector<32x1xf32>
    %191 = arith.addf %189, %190 : vector<32x1xf32>
    %192 = arith.mulf %191, %178 : vector<32x1xf32>
    %cst_55 = arith.constant 0.000000e+00 : f32
    %193 = vector.broadcast %cst_55 : f32 to vector<32x1xf32>
    %194 = arith.subf %193, %172 : vector<32x1xf32>
    %195 = arith.mulf %194, %172 : vector<32x1xf32>
    %196 = math.exp %195 : vector<32x1xf32>
    %197 = arith.mulf %192, %196 : vector<32x1xf32>
    %cst_56 = arith.constant 1.000000e+00 : f32
    %198 = vector.broadcast %cst_56 : f32 to vector<32x1xf32>
    %199 = arith.subf %198, %197 : vector<32x1xf32>
    %200 = arith.mulf %171, %199 : vector<32x1xf32>
    %cst_57 = arith.constant 0.000000e+00 : f32
    %201 = vector.broadcast %cst_57 : f32 to vector<32x1xf32>
    %202 = arith.cmpf oge, %166, %201 : vector<32x1xf32>
    %cst_58 = arith.constant 1.000000e+00 : f32
    %cst_59 = arith.constant -1.000000e+00 : f32
    %203 = vector.broadcast %cst_58 : f32 to vector<32x1xf32>
    %204 = vector.broadcast %cst_59 : f32 to vector<32x1xf32>
    %205 = arith.select %202, %203, %204 : vector<32x1xi1>, vector<32x1xf32>
    %206 = math.absf %166 : vector<32x1xf32>
    %cst_60 = arith.constant 0.327591091 : f32
    %207 = vector.broadcast %cst_60 : f32 to vector<32x1xf32>
    %208 = arith.mulf %207, %206 : vector<32x1xf32>
    %cst_61 = arith.constant 1.000000e+00 : f32
    %209 = vector.broadcast %cst_61 : f32 to vector<32x1xf32>
    %210 = arith.addf %209, %208 : vector<32x1xf32>
    %cst_62 = arith.constant 1.000000e+00 : f32
    %211 = vector.broadcast %cst_62 : f32 to vector<32x1xf32>
    %212 = arith.divf %211, %210 : vector<32x1xf32>
    %cst_63 = arith.constant 1.06140542 : f32
    %213 = vector.broadcast %cst_63 : f32 to vector<32x1xf32>
    %214 = arith.mulf %213, %212 : vector<32x1xf32>
    %cst_64 = arith.constant -1.45315206 : f32
    %215 = vector.broadcast %cst_64 : f32 to vector<32x1xf32>
    %216 = arith.addf %214, %215 : vector<32x1xf32>
    %217 = arith.mulf %216, %212 : vector<32x1xf32>
    %cst_65 = arith.constant 1.42141378 : f32
    %218 = vector.broadcast %cst_65 : f32 to vector<32x1xf32>
    %219 = arith.addf %217, %218 : vector<32x1xf32>
    %220 = arith.mulf %219, %212 : vector<32x1xf32>
    %cst_66 = arith.constant -0.284496725 : f32
    %221 = vector.broadcast %cst_66 : f32 to vector<32x1xf32>
    %222 = arith.addf %220, %221 : vector<32x1xf32>
    %223 = arith.mulf %222, %212 : vector<32x1xf32>
    %cst_67 = arith.constant 0.254829586 : f32
    %224 = vector.broadcast %cst_67 : f32 to vector<32x1xf32>
    %225 = arith.addf %223, %224 : vector<32x1xf32>
    %226 = arith.mulf %225, %212 : vector<32x1xf32>
    %cst_68 = arith.constant 0.000000e+00 : f32
    %227 = vector.broadcast %cst_68 : f32 to vector<32x1xf32>
    %228 = arith.subf %227, %206 : vector<32x1xf32>
    %229 = arith.mulf %228, %206 : vector<32x1xf32>
    %230 = math.exp %229 : vector<32x1xf32>
    %231 = arith.mulf %226, %230 : vector<32x1xf32>
    %cst_69 = arith.constant 1.000000e+00 : f32
    %232 = vector.broadcast %cst_69 : f32 to vector<32x1xf32>
    %233 = arith.subf %232, %231 : vector<32x1xf32>
    %234 = arith.mulf %205, %233 : vector<32x1xf32>
    %235 = arith.subf %200, %234 : vector<32x1xf32>
    %cst_70 = arith.constant 5.000000e-01 : f32
    %236 = vector.broadcast %cst_70 : f32 to vector<32x1xf32>
    %237 = arith.mulf %236, %235 : vector<32x1xf32>
    %cst_71 = arith.constant 9.99999996E-13 : f32
    %238 = vector.broadcast %cst_71 : f32 to vector<32x1xf32>
    %239 = arith.maximumf %237, %238 : vector<32x1xf32>
    %240 = math.log %239 : vector<32x1xf32>
    %241 = arith.addf %152, %240 : vector<32x1xf32>
    %242 = vector.extract_strided_slice %241 {offsets = [0, 0], sizes = [8, 1], strides = [1, 1]} : vector<32x1xf32> to vector<8x1xf32>
    %243 = vector.extract_strided_slice %241 {offsets = [8, 0], sizes = [8, 1], strides = [1, 1]} : vector<32x1xf32> to vector<8x1xf32>
    %244 = arith.addf %242, %243 : vector<8x1xf32>
    %245 = vector.extract_strided_slice %241 {offsets = [16, 0], sizes = [8, 1], strides = [1, 1]} : vector<32x1xf32> to vector<8x1xf32>
    %246 = arith.addf %244, %245 : vector<8x1xf32>
    %247 = vector.extract_strided_slice %241 {offsets = [24, 0], sizes = [8, 1], strides = [1, 1]} : vector<32x1xf32> to vector<8x1xf32>
    %248 = arith.addf %246, %247 : vector<8x1xf32>
    %cst_72 = arith.constant 2.500000e-01 : f32
    %249 = vector.broadcast %cst_72 : f32 to vector<8x1xf32>
    %250 = arith.mulf %248, %249 : vector<8x1xf32>
    %cst_73 = arith.constant 0.000000e+00 : f32
    %251 = vector.broadcast %cst_73 : f32 to vector<8x126xf32>
    %252 = tpu.concatenate %250, %67, %251 in 1 : vector<8x1xf32>, vector<8x1xf32>, vector<8x126xf32> -> vector<8x128xf32>
    %c0_74 = arith.constant 0 : index
    %c0_75 = arith.constant 0 : index
    %253 = vector.load %arg7[%c0_74, %c0_75] : memref<8x128xf32, #tpu.memory_space<vmem>>, vector<8x128xf32>
    tpu.vector_store %arg7[%c0_74, %c0_75], %252 {strides = array<i32>} : memref<8x128xf32, #tpu.memory_space<vmem>>, vector<8x128xf32>,
    return
  }
}

</mosaic_0001>

<bundles_post_ra>
// kernel: tempo_forward.1
= control target key start
LH: loop header
LB: loop body
LE: loop exit
PB: predicated region body
PF: predicated region fallthrough
CT: control target
= control target key end

     0   :  { %vm32_vm0 = vcmask 261120   ;;  %s1013_s30 = smov 4   ;;  %vm68_vm1 = vcmask 523264   ;;  %s1016_s13 = smov 5   ;;  %vm253_vm2 = vcmask 1043456   ;;  %vm119_vm3 = vcmask 31744   ;;  %s1400_s2 = inlined_call_operand.vmem [shape: f32[32,80], index: 2, kind: input, shape index: {}]   ;;  %s1401_s3 = inlined_call_operand.vmem [shape: f32[64,16], index: 3, kind: input, shape index: {}]   ;;  %s1402_s0 = inlined_call_operand.vmem [shape: f32[8,32], index: 0, kind: input, shape index: {}]   ;;  %s1403_s6 = inlined_call_operand.vmem [shape: f32[1,64], index: 6, kind: input, shape index: {}]   ;;  %s1404_s1 = inlined_call_operand.vmem [shape: f32[32,8], index: 1, kind: input, shape index: {}]   ;;  %s1405_s4 = inlined_call_operand.vmem [shape: f32[4,32], index: 4, kind: input, shape index: {}]   ;;  %s1406_s5 = inlined_call_operand.vmem [shape: f32[16,8], index: 5, kind: input, shape index: {}]   ;;  %s1407_s7 = inlined_call_operand.vmem [shape: f32[8,128], index: 7, kind: output, shape index: {}]  }
   0x1   :  { %v31_v0 = vld [vmem:[%s1400_s2 + $0x18] sm:$0xff]  ;;  %v30_v1 = vld [vmem:[%s1400_s2 + $0x10] sm:$0xff]  ;;  %v29_v3 = vld [vmem:[%s1400_s2 + $0x8] sm:$0xff]  ;;  %s1017_s14 = smov 112   ;;  %vm315_vm4 = vcmask 130048   ;;  %s1022_s21 = smov 28  }
   0x2   :  { %48 = vmatpush.msra.mxu0 %v31_v0  ;;  %v64_v2 = vld [vmem:[%s1401_s3 + $0x38] sm:$0xff]  ;;  %v63_v4 = vld [vmem:[%s1401_s3 + $0x30] sm:$0xff]  ;;  %v62_v5 = vld [vmem:[%s1401_s3 + $0x28] sm:$0xff]  ;;  %s1023_s22 = smov 111   ;;  %s1024_s23 = smov 1  }
   0x3   :  { %80 = vmatpush.msra.mxu1 %v64_v2  ;;  %v28_v6 = vld [vmem:[%s1400_s2] sm:$0xff]  ;;  %v60_v9 = vld [vmem:[%s1401_s3 + $0x18] sm:$0xff]  ;;  %v59_v10 = vld [vmem:[%s1401_s3 + $0x10] sm:$0xff]  ;;  %s1019_s2 = smov 127   ;;  %s1026_s24 = smov 16  }
   0x4   :  { %49 = vmatpush.msra.mxu0 %v30_v1  ;;  %v1093_v7 = vld [vmem:[%s1402_s0] sm:$0xff]  ;;  %v58_v11 = vld [vmem:[%s1401_s3 + $0x8] sm:$0xff]  ;;  %v151_v13 = vld [vmem:[%s1404_s1 + $0x10] sm:$0xff]  ;;  %s1028_s27 = smov 104  }
   0x5   :  { %81 = vmatpush.msra.mxu1 %v63_v4  ;;  %v61_v8 = vld [vmem:[%s1401_s3 + $0x20] sm:$0xff]  ;;  %196 = vrot.lane.b32.xlu1 %v151_v13, %s1013_s30  ;;  %v152_v15 = vld [vmem:[%s1404_s1 + $0x18] sm:$0xff]  ;;  %v1125_v16 = vld [vmem:[%s1404_s1 + $0x8] sm:$0xff] }
   0x6   :  { %50 = vmatpush.msra.mxu0 %v29_v3  ;;  %v57_v12 = vld [vmem:[%s1401_s3] sm:$0xff]  ;;  %v299_v1 = vld [vmem:[%s1406_s5 + $0x8] sm:$0xff] }
   0x7   :  { %82 = vmatpush.msra.mxu1 %v62_v5  ;;  %v149_v14 = vld [vmem:[%s1404_s1] sm:$0xff]  ;;  %s1014_s1 = smov 124   ;;  %904 = vmatpush.msra.mxu3 %v299_v1 }
   0x8   :  { %51 = vmatpush.msra.mxu0 %v28_v6  ;;  %154 = vrot.lane.b32.xlu0 %v149_v14, %s1013_s30  ;;  %v1133_v19 = vld [vmem:[%s1403_s6] ss:$0 sm:$0xff]  ;;  %s1015_s6 = smov 64  }
   0x9   :  { %883 = vmatmul.msk.f32.vlgmr.msra.gmra.mxu0 %vm32_vm0, %v1093_v7  ;;  %83 = vmatpush.msra.mxu1 %v61_v8  ;;  %v237_v40 = vld [vmem:[%s1405_s4] sm:$0xf]  ;;  %s1018_s4 = smov 80  }
   0xa   :  { %887 = vmatpush.msk.msra.mxu2 %vm253_vm2, %v237_v40  ;;  %v298_v2 = vld [vmem:[%s1406_s5] sm:$0xff]  ;;  %338 = vmatpush.msrb.mxu0 %v299_v1  ;;  %s1020_s5 = smov 27  }
   0xb   :  { %84 = vmatpush.msra.mxu1 %v60_v9  ;;  %905 = vmatpush.msra.mxu3 %v298_v2 }
   0xc   :  { %339 = vmatpush.msrb.mxu0 %v298_v2 }
   0xd   :  { %85 = vmatpush.msra.mxu1 %v59_v10  ;;  %217 = vrot.lane.b32.xlu1 %v152_v15, %s1013_s30 }
   0xf   :  { %86 = vmatpush.msra.mxu1 %v58_v11 }
  0x10   :  { %175 = vrot.lane.b32.xlu0 %v1125_v16, %s1013_s30 }
  0x11   :  { %87 = vmatpush.msra.mxu1 %v57_v12 }
  0x77   :  { %v197_v27 = vpop.permute.xlu1 %196 }
  0x7a   :  { %v155_v32 = vpop.permute.xlu0 %154 }
  0x7f   :  { %v218_v33 = vpop.permute.xlu1 %217 }
  0x82   :  { %v176_v38 = vpop.permute.xlu0 %175 }
  0x86   :  { %v53_v17 = vpop.f32.mrf.mxu0 }
  0x87   :  { %v56_v18 = vmax.f32 %v53_v17, 0.0 }
  0x89   :  { %884 = vmatmul.msk.f32.vlgmr.msra.gmra.mxu1 %vm68_vm1, %v56_v18 }
 0x106   :  { %v89_v20 = vpop.f32.mrf.mxu1 }
 0x107   :  { %v1136_v21 = vadd.f32 %v1133_v19, %v89_v20 }
 0x109   :  { %v93_v22 = vand.u32 2147483647, %v1136_v21  ;;  %v92_v29 = vmax.f32 %v1136_v21, 0.0 }
 0x10b   :  { %v94_v23 = vsub.f32 0.0, %v93_v22 }
 0x10d   :  { %v95_v24 = vmul.f32 1.442695, %v94_v23 }
 0x10f   :  { %926 = vpow2.f32 %v95_v24 }
 0x115   :  { %v927_v25 = vpop.eup %926 }
 0x116   :  { %v97_v26 = vadd.f32 1.0, %v927_v25 }
 0x118   :  { %928 = vlog2.f32 %v97_v26 }
 0x11e   :  { %v929_v28 = vpop.eup %928 }
 0x11f   :  { %v99_v30 = vmul.f32 0.6931472, %v929_v28 }
 0x121   :  { %v100_v31 = vadd.f32 %v99_v30, %v92_v29 }
 0x123   :  { %v1140_v34 = vadd.f32 0.0001, %v100_v31 }
 0x125   :  { %v199_v35 = vmul.f32 %v197_v27, %v1140_v34  ;;  %v157_v36 = vmul.f32 %v155_v32, %v1140_v34  ;;  %v220_v37 = vmul.f32 %v218_v33, %v1140_v34  ;;  %v178_v39 = vmul.f32 %v176_v38, %v1140_v34 }
 0x126   :  { %v106_v33 = vmul.f32 %v1136_v21, %v1136_v21 }
 0x127   :  { %222 = vrot.lane.b32.xlu1 %v220_v37, %s1014_s1  ;;  %201 = vrot.lane.b32.xlu0 %v199_v35, %s1014_s1 }
 0x128   :  { %159 = vrot.lane.b32.xlu2 %v157_v36, %s1014_s1 }
 0x12f   :  { %287 = vrot.lane.b32.xlu1 %v53_v17, %s1015_s6 }
 0x130   :  { %180 = vrot.lane.b32.xlu2 %v178_v39, %s1014_s1 }
 0x137   :  { %205 = vrot.lane.b32.xlu1 %v151_v13, %s1016_s13 }
 0x138   :  { %238 = vrot.lane.b32.xlu2 %v1133_v19, %s1017_s14 }
 0x140   :  { %163 = vrot.lane.b32.xlu2 %v149_v14, %s1016_s13 }
 0x148   :  { %226 = vrot.lane.b32.xlu2 %v152_v15, %s1016_s13 }
 0x182   :  { %v160_v41 = vpop.permute.xlu2 %159 }
 0x183   :  { %v162_v42 = vadd.f32 %v160_v41, %v1136_v21 }
 0x185   :  { %888 = vmatmul.msk.f32.vlgmr.msra.gmra.mxu2 %vm119_vm3, %v162_v42 }
 0x18a   :  { %v181_v43 = vpop.permute.xlu2 %180 }
 0x18b   :  { %v183_v44 = vadd.f32 %v181_v43, %v1136_v21  ;;  %v1021_v43 = vmov 8  }
 0x18c   :  { %924 = vset.pattern.permute.xlu2 %v1021_v43  ;;  %923 = vset.pattern.permute.xlu1 %v1021_v43 }
 0x18d   :  { %889 = vmatmul.msk.f32.gmra.mxu2 %vm119_vm3, %v183_v44  ;;  %922 = vset.pattern.permute.xlu0 %v1021_v43 }
 0x192   :  { %v239_v50 = vpop.permute.xlu2 %238 }
 0x199   :  { %v202_v45 = vpop.permute.xlu0 %201  ;;  %v223_v47 = vpop.permute.xlu1 %222 }
 0x19a   :  { %v204_v46 = vadd.f32 %v202_v45, %v1136_v21  ;;  %v225_v48 = vadd.f32 %v223_v47, %v1136_v21  ;;  %v164_v8 = vpop.permute.xlu2 %163 }
 0x19b   :  { %v166_v9 = vmul.f32 %v164_v8, %v1140_v34 }
 0x19c   :  { %890 = vmatmul.msk.f32.gmra.mxu2 %vm119_vm3, %v204_v46 }
 0x1a1   :  { %v288_v62 = vpop.permute.xlu1 %287 }
 0x1a2   :  { %v227_v12 = vpop.permute.xlu2 %226 }
 0x1a3   :  { %v229_v13 = vmul.f32 %v227_v12, %v1140_v34 }
 0x1a4   :  { %891 = vmatmul.msk.f32.gmra.mxu2 %vm119_vm3, %v225_v48 }
 0x1a9   :  { %v206_v10 = vpop.permute.xlu1 %205 }
 0x1aa   :  { %v208_v11 = vmul.f32 %v206_v10, %v1140_v34 }
 0x208   :  { %v274_v49 = vpop.f32.mrf.mxu2 }
 0x209   :  { %v275_v54 = vadd.f32 %v274_v49, %v239_v50 }
 0x20b   :  { %v294_v55 = vmax.f32 %v275_v54, 0.0  ;;  %v290_v63 = vadd.f32 %v288_v62, %v275_v54 }
 0x20d   :  { %v353_v0 = vsel %vm315_vm4, %v290_v63, -inf }
 0x210   :  { %v277_v51 = vpop.f32.mrf.mxu2 }
 0x211   :  { %v278_v52 = vadd.f32 %v277_v51, %v239_v50 }
 0x213   :  { %v295_v53 = vmax.f32 %v278_v52, 0.0  ;;  %v1180_v3 = vadd.f32 %v288_v62, %v278_v52 }
 0x215   :  { %306 = vrot.lane.b32.xlu0 %v295_v53, %s1017_s14  ;;  %v356_v5 = vsel %vm315_vm4, %v1180_v3, -inf }
 0x21d   :  { %304 = vrot.lane.b32.xlu0 %v294_v55, %s1017_s14 }
 0x21f   :  { %v280_v56 = vpop.f32.mrf.mxu2 }
 0x220   :  { %v281_v57 = vadd.f32 %v280_v56, %v239_v50 }
 0x222   :  { %v296_v58 = vmax.f32 %v281_v57, 0.0  ;;  %v292_v4 = vadd.f32 %v288_v62, %v281_v57 }
 0x224   :  { %308 = vrot.lane.b32.xlu1 %v296_v58, %s1017_s14  ;;  %v359_v6 = vsel %vm315_vm4, %v292_v4, -inf }
 0x225   :  { %184 = vrot.lane.b32.xlu0 %v1125_v16, %s1016_s13 }
 0x227   :  { %v283_v59 = vpop.f32.mrf.mxu2 }
 0x228   :  { %v284_v60 = vadd.f32 %v283_v59, %v239_v50 }
 0x22a   :  { %v297_v61 = vmax.f32 %v284_v60, 0.0  ;;  %v293_v24 = vadd.f32 %v288_v62, %v284_v60 }
 0x22c   :  { %310 = vrot.lane.b32.xlu2 %v297_v61, %s1017_s14  ;;  %v362_v25 = vsel %vm315_vm4, %v293_v24, -inf }
 0x22d   :  { %312 = vrot.lane.b32.xlu0 %v1133_v19, %s1018_s4 }
 0x24e   :  { %354 = vmax.xlane.f32.xlu1 %v353_v0 }
 0x255   :  { %357 = vmax.xlane.f32.xlu2 %v356_v5 }
 0x257   :  { %360 = vmax.xlane.f32.xlu0 %v359_v6 }
 0x267   :  { %168 = vrot.lane.b32.xlu1 %v166_v9, %s1019_s2 }
 0x26b   :  { %210 = vrot.lane.b32.xlu0 %v208_v11, %s1019_s2 }
 0x26f   :  { %231 = vrot.lane.b32.xlu1 %v229_v13, %s1019_s2 }
 0x286   :  { %v311_v19 = vpop.permute.xlu2 %310 }
 0x287   :  { %v307_v14 = vpop.permute.xlu0 %306 }
 0x288   :  { %893 = vmatmul.msk.f32.vlgmr.msra.gmra.mxu3 %vm315_vm4, %v307_v14 }
 0x28f   :  { %v305_v15 = vpop.permute.xlu0 %304 }
 0x290   :  { %892 = vmatmul.msk.f32.vlgmr.msrb.gmra.mxu0 %vm315_vm4, %v305_v15  ;;  %v1243_v15 = vmul.f32 %v1140_v34, %v1140_v34 }
 0x296   :  { %v309_v16 = vpop.permute.xlu1 %308 }
 0x297   :  { %v185_v17 = vpop.permute.xlu0 %184  ;;  %894 = vmatmul.msk.f32.gmra.mxu3 %vm315_vm4, %v309_v16 }
 0x298   :  { %v187_v18 = vmul.f32 %v185_v17, %v1140_v34 }
 0x29a   :  { %189 = vrot.lane.b32.xlu2 %v187_v18, %s1019_s2 }
 0x29f   :  { %895 = vmatmul.msk.f32.gmra.mxu3 %vm315_vm4, %v311_v19  ;;  %v313_v28 = vpop.permute.xlu0 %312 }
 0x2a2   :  { %128 = vrot.lane.b32.xlu2 %v1093_v7, %s1017_s14 }
 0x2c1   :  { %v355_v20 = vpop.xlane.xlu1 %354 }
 0x2c2   :  { %v365_v22 = vsub.f32 %v290_v63, %v355_v20 }
 0x2c4   :  { %v369_v23 = vmul.f32 1.442695, %v365_v22 }
 0x2c6   :  { %930 = vpow2.f32 %v369_v23 }
 0x2c8   :  { %v358_v39 = vpop.xlane.xlu2 %357 }
 0x2c9   :  { %v366_v47 = vsub.f32 %v1180_v3, %v358_v39 }
 0x2ca   :  { %v361_v40 = vpop.xlane.xlu0 %360 }
 0x2cb   :  { %363 = vmax.xlane.f32.xlu2 %v362_v25  ;;  %v367_v42 = vsub.f32 %v292_v4, %v361_v40  ;;  %v371_v51 = vmul.f32 1.442695, %v366_v47 }
 0x2cc   :  { %v1196_v26 = vpop.eup %930 }
 0x2cd   :  { %v377_v27 = vsel %vm315_vm4, %v1196_v26, 0.0  ;;  %v373_v44 = vmul.f32 1.442695, %v367_v42 }
 0x2ce   :  { %378 = vadd.xlane.f32.xlu1 %v377_v27 }
 0x2cf   :  { %932 = vpow2.f32 %v373_v44 }
 0x2d5   :  { %v1211_v46 = vpop.eup %932 }
 0x2d6   :  { %v383_v49 = vsel %vm315_vm4, %v1211_v46, 0.0 }
 0x2d9   :  { %v169_v60 = vpop.permute.xlu1 %168 }
 0x2da   :  { %v171_v61 = vadd.f32 %v169_v60, %v1136_v21 }
 0x2dc   :  { %v172_v0 = vmul.f32 1.442695, %v171_v61 }
 0x2dd   :  { %v211_v53 = vpop.permute.xlu0 %210 }
 0x2de   :  { %v213_v54 = vadd.f32 %v211_v53, %v1136_v21 }
 0x2e0   :  { %v214_v58 = vmul.f32 1.442695, %v213_v54 }
 0x2e1   :  { %v232_v3 = vpop.permute.xlu1 %231 }
 0x2e2   :  { %v234_v5 = vadd.f32 %v232_v3, %v1136_v21 }
 0x2e4   :  { %v235_v8 = vmul.f32 1.442695, %v234_v5 }
 0x2f4   :  { %v190_v41 = vpop.permute.xlu2 %189 }
 0x2f5   :  { %v192_v62 = vadd.f32 %v190_v41, %v1136_v21 }
 0x2f7   :  { %v193_v1 = vmul.f32 1.442695, %v192_v62 }
 0x2fc   :  { %v1209_v45 = vpop.permute.xlu2 %128 }
 0x2fd   :  { %v131_v25 = vsub.f32 %v1136_v21, %v1209_v45 }
 0x2ff   :  { %v132_v27 = vmul.f32 %v131_v25, %v131_v25 }
 0x30b   :  { %v344_v29 = vpop.f32.mrf.mxu3 }
 0x30c   :  { %v345_v30 = vadd.f32 %v344_v29, %v313_v28 }
 0x30d   :  { %v341_v31 = vpop.f32.mrf.mxu0 }
 0x30e   :  { %v1200_v32 = vadd.f32 %v341_v31, %v313_v28  ;;  %508 = vrot.lane.b32.xlu2 %v345_v30, %s1020_s5 }
 0x310   :  { %506 = vrot.lane.b32.xlu0 %v1200_v32, %s1020_s5 }
 0x316   :  { %108 = vrot.lane.b32.xlu2 %v106_v33, %s1013_s30 }
 0x31a   :  { %v347_v35 = vpop.f32.mrf.mxu3 }
 0x31b   :  { %v348_v36 = vadd.f32 %v347_v35, %v313_v28 }
 0x31d   :  { %510 = vrot.lane.b32.xlu1 %v348_v36, %s1020_s5 }
 0x322   :  { %v350_v37 = vpop.f32.mrf.mxu3 }
 0x323   :  { %v1206_v38 = vadd.f32 %v350_v37, %v313_v28 }
 0x325   :  { %512 = vrot.lane.b32.xlu0 %v1206_v38, %s1020_s5 }
 0x33e   :  { %v364_v48 = vpop.xlane.xlu2 %363 }
 0x33f   :  { %v368_v50 = vsub.f32 %v293_v24, %v364_v48  ;;  %384 = vadd.xlane.f32.xlu2 %v383_v49 }
 0x341   :  { %v375_v52 = vmul.f32 1.442695, %v368_v50 }
 0x343   :  { %934 = vpow2.f32 %v375_v52 }
 0x344   :  { %936 = vpow2.f32 %v371_v51 }
 0x345   :  { %938 = vpow2.f32 %v214_v58 }
 0x346   :  { %940 = vpow2.f32 %v172_v0 }
 0x347   :  { %942 = vpow2.f32 %v193_v1 }
 0x348   :  { %944 = vlog2.f32 %v1140_v34 }
 0x349   :  { %v1217_v55 = vpop.eup %934  ;;  %946 = vpow2.f32 %v235_v8 }
 0x34a   :  { %v386_v56 = vsel %vm315_vm4, %v1217_v55, 0.0  ;;  %v1221_v57 = vpop.eup %936 }
 0x34b   :  { %387 = vadd.xlane.f32.xlu1 %v386_v56  ;;  %v380_v59 = vsel %vm315_vm4, %v1221_v57, 0.0  ;;  %v939_v63 = vpop.eup %938 }
 0x34c   :  { %v941_v2 = vpop.eup %940 }
 0x34d   :  { %v943_v4 = vpop.eup %942 }
 0x34e   :  { %v945_v11 = vpop.eup %944 }
 0x34f   :  { %381 = vadd.xlane.f32.xlu0 %v380_v59  ;;  %v1239_v14 = vmul.f32 0.6931472, %v945_v11  ;;  %v947_v19 = vpop.eup %946 }
 0x351   :  { %v104_v22 = vsub.f32 0.0, %v1239_v14 }
 0x357   :  { %409 = vperm.xlu2 %924, %v939_v63  }
 0x35f   :  { %480 = vrot.lane.b32.xlu2 %v345_v30, %s1022_s21 }
 0x363   :  { %399 = vperm.xlu0 %922, %v941_v2  }
 0x364   :  { %404 = vperm.xlu1 %923, %v943_v4  }
 0x368   :  { %v509_v6 = vpop.permute.xlu2 %508 }
 0x369   :  { %v519_v9 = vsub.f32 %v1093_v7, %v509_v6 }
 0x36b   :  { %v1231_v10 = vmul.f32 0.70710677, %v519_v9  ;;  %482 = vrot.lane.b32.xlu0 %v348_v36, %s1022_s21  ;;  %v1025_v9 = vmov -1.0  }
 0x36c   :  { %478 = vrot.lane.b32.xlu1 %v1200_v32, %s1022_s21 }
 0x36d   :  { %v901_v12 = vclamps-f32 %v1231_v10, 6.0  ;;  %v1267_v10 = vpop.xlane.xlu1 %378 }
 0x36f   :  { %v687_v13 = vand.u32 2147483647, %v901_v12  ;;  %vm679_vm9 = vcmp.ge.f32.partialorder %v901_v12, 0.0 }
 0x370   :  { %v109_v16 = vpop.permute.xlu2 %108  ;;  %v683_v11 = vsel %vm679_vm9, 1.0, %v1025_v9 }
 0x371   :  { %v691_v17 = vmul.f32 0.3275911, %v687_v13  ;;  %v111_v18 = vadd.f32 %v109_v16, %v1243_v15  ;;  %v795_v42 = vsub.f32 0.0, %v687_v13 }
 0x373   :  { %v695_v20 = vadd.f32 1.0, %v691_v17  ;;  %v112_v23 = vmul.f32 0.5, %v111_v18  ;;  %138 = vrot.lane.b32.xlu0 %v1093_v7, %s1023_s22  ;;  %v799_v47 = vmul.f32 %v795_v42, %v687_v13 }
 0x374   :  { %414 = vperm.xlu1 %923, %v947_v19  }
 0x375   :  { %948 = vrcp.f32 %v695_v20  ;;  %v113_v24 = vadd.f32 %v112_v23, %v104_v22  ;;  %v724_v31 = vand.u32 2147483648, %v695_v20  ;;  %v722_v33 = vand.u32 2147483647, %v695_v20 }
 0x376   :  { %vm718_vm6 = vweird.f32 %v695_v20  ;;  %v804_v52 = vmul.f32 1.442695, %v799_v47 }
 0x377   :  { %v885_v34 = vadd.f32 -0.5, %v113_v24  ;;  %v725_v37 = vor.u32 1.1754944e-38, %v724_v31  ;;  %vm723_vm8 = vcmp.eq.f32.partialorder %v722_v33, 8.507059e+37 }
 0x379   :  { %116 = vrot.lane.b32.xlu2 %v885_v34, %s1014_s1 }
 0x37b   :  { %v949_v28 = vpop.eup %948 }
 0x37c   :  { %v714_v29 = vmul.f32 %v949_v28, %v695_v20  ;;  %134 = vrot.lane.b32.xlu1 %v132_v27, %s1024_s23  ;;  %vm719_vm5 = vweird.f32 %v949_v28 }
 0x37d   :  { %vm720_vm7 = vmor %vm718_vm6, %vm719_vm5 }
 0x37e   :  { %v715_v30 = vsub.f32 1.0, %v714_v29 }
 0x380   :  { %v716_v32 = vmul.f32 %v949_v28, %v715_v30 }
 0x381   :  { %484 = vrot.lane.b32.xlu2 %v1206_v38, %s1022_s21 }
 0x382   :  { %v507_v35 = vpop.permute.xlu0 %506  ;;  %v717_v36 = vadd.f32 %v949_v28, %v716_v32 }
 0x383   :  { %v518_v21 = vsub.f32 %v1093_v7, %v507_v35 }
 0x384   :  { %v721_v39 = vsel %vm720_vm7, %v949_v28, %v717_v36 }
 0x385   :  { %v1255_v40 = vmul.f32 0.70710677, %v518_v21  ;;  %v726_v41 = vsel %vm723_vm8, %v725_v37, %v721_v39 }
 0x386   :  { %v759_v43 = vmul.f32 1.0614054, %v726_v41 }
 0x387   :  { %v900_v44 = vclamps-f32 %v1255_v40, 6.0 }
 0x388   :  { %v763_v45 = vadd.f32 -1.4531521, %v759_v43 }
 0x389   :  { %v686_v38 = vand.u32 2147483647, %v900_v44  ;;  %vm678_vm0 = vcmp.ge.f32.partialorder %v900_v44, 0.0 }
 0x38a   :  { %v767_v48 = vmul.f32 %v763_v45, %v726_v41 }
 0x38b   :  { %v690_v49 = vmul.f32 0.3275911, %v686_v38  ;;  %v794_v20 = vsub.f32 0.0, %v686_v38 }
 0x38c   :  { %v771_v50 = vadd.f32 1.4214138, %v767_v48 }
 0x38d   :  { %v694_v51 = vadd.f32 1.0, %v690_v49  ;;  %v798_v27 = vmul.f32 %v794_v20, %v686_v38 }
 0x38e   :  { %v775_v53 = vmul.f32 %v771_v50, %v726_v41 }
 0x38f   :  { %950 = vrcp.f32 %v694_v51  ;;  %v709_v3 = vand.u32 2147483648, %v694_v51  ;;  %v707_v6 = vand.u32 2147483647, %v694_v51  ;;  %vm703_vm11 = vweird.f32 %v694_v51  ;;  %v511_v29 = vpop.permute.xlu1 %510 }
 0x390   :  { %v779_v54 = vadd.f32 -0.28449672, %v775_v53  ;;  %952 = vpow2.f32 %v804_v52  ;;  %v802_v31 = vmul.f32 1.442695, %v798_v27  ;;  %v520_v33 = vsub.f32 %v1093_v7, %v511_v29 }
 0x391   :  { %v710_v18 = vor.u32 1.1754944e-38, %v709_v3  ;;  %vm708_vm13 = vcmp.eq.f32.partialorder %v707_v6, 8.507059e+37 }
 0x392   :  { %v783_v56 = vmul.f32 %v779_v54, %v726_v41  ;;  %v1273_v39 = vmul.f32 0.70710677, %v520_v33 }
 0x394   :  { %v787_v58 = vadd.f32 0.2548296, %v783_v56  ;;  %v902_v49 = vclamps-f32 %v1273_v39, 6.0 }
 0x395   :  { %v951_v59 = vpop.eup %950 }
 0x396   :  { %v699_v60 = vmul.f32 %v951_v59, %v694_v51  ;;  %v791_v61 = vmul.f32 %v787_v58, %v726_v41  ;;  %v953_v63 = vpop.eup %952  ;;  %vm704_vm10 = vweird.f32 %v951_v59 }
 0x397   :  { %v513_v62 = vpop.permute.xlu0 %512  ;;  %vm705_vm12 = vmor %vm703_vm11, %vm704_vm10  ;;  %vm680_vm10 = vcmp.ge.f32.partialorder %v902_v49, 0.0 }
 0x398   :  { %v700_v0 = vsub.f32 1.0, %v699_v60  ;;  %v521_v1 = vsub.f32 %v1093_v7, %v513_v62  ;;  %v811_v2 = vmul.f32 %v953_v63, %v791_v61  ;;  %v682_v60 = vsel %vm678_vm0, 1.0, %v1025_v9 }
 0x399   :  { %v1281_v61 = vand.u32 2147483647, %v902_v49 }
 0x39a   :  { %v1263_v4 = vmul.f32 0.70710677, %v521_v1  ;;  %v701_v5 = vmul.f32 %v951_v59, %v700_v0  ;;  %v815_v8 = vsub.f32 1.0, %v811_v2 }
 0x39b   :  { %v692_v0 = vmul.f32 0.3275911, %v1281_v61 }
 0x39c   :  { %v903_v13 = vclamps-f32 %v1263_v4, 6.0  ;;  %v702_v16 = vadd.f32 %v951_v59, %v701_v5  ;;  %v819_v17 = vmul.f32 %v815_v8, %v683_v11 }
 0x39d   :  { %v696_v6 = vadd.f32 1.0, %v692_v0 }
 0x39e   :  { %v689_v12 = vand.u32 2147483647, %v903_v13  ;;  %v706_v19 = vsel %vm705_vm12, %v951_v59, %v702_v16  ;;  %828 = vrot.lane.b32.xlu0 %v819_v17, %s1024_s23  ;;  %vm681_vm5 = vcmp.ge.f32.partialorder %v903_v13, 0.0 }
 0x39f   :  { %v711_v22 = vsel %vm708_vm13, %v710_v18, %v706_v19  ;;  %vm733_vm7 = vweird.f32 %v696_v6 }
 0x3a0   :  { %v693_v23 = vmul.f32 0.3275911, %v689_v12  ;;  %v758_v24 = vmul.f32 1.0614054, %v711_v22  ;;  %v797_v54 = vsub.f32 0.0, %v689_v12 }
 0x3a2   :  { %v697_v25 = vadd.f32 1.0, %v693_v23  ;;  %v762_v34 = vadd.f32 -1.4531521, %v758_v24  ;;  %v801_v44 = vmul.f32 %v797_v54, %v689_v12 }
 0x3a4   :  { %954 = vrcp.f32 %v697_v25  ;;  %v766_v28 = vmul.f32 %v762_v34, %v711_v22  ;;  %v754_v43 = vand.u32 2147483648, %v697_v25  ;;  %v752_v38 = vand.u32 2147483647, %v697_v25 }
 0x3a5   :  { %956 = vpow2.f32 %v802_v31  ;;  %vm748_vm15 = vweird.f32 %v697_v25  ;;  %v808_v3 = vmul.f32 1.442695, %v801_v44 }
 0x3a6   :  { %v770_v30 = vadd.f32 1.4214138, %v766_v28  ;;  %v755_v52 = vor.u32 1.1754944e-38, %v754_v43  ;;  %vm753_vm2 = vcmp.eq.f32.partialorder %v752_v38, 8.507059e+37 }
 0x3a8   :  { %v774_v32 = vmul.f32 %v770_v30, %v711_v22 }
 0x3aa   :  { %v955_v35 = vpop.eup %954  ;;  %v778_v36 = vadd.f32 -0.28449672, %v774_v32 }
 0x3ab   :  { %v744_v21 = vmul.f32 %v955_v35, %v697_v25  ;;  %vm749_vm14 = vweird.f32 %v955_v35  ;;  %v957_v48 = vpop.eup %956 }
 0x3ac   :  { %v782_v37 = vmul.f32 %v778_v36, %v711_v22  ;;  %vm750_vm1 = vmor %vm748_vm15, %vm749_vm14 }
 0x3ad   :  { %v745_v41 = vsub.f32 1.0, %v744_v21 }
 0x3ae   :  { %v786_v42 = vadd.f32 0.2548296, %v782_v37 }
 0x3af   :  { %v746_v45 = vmul.f32 %v955_v35, %v745_v41 }
 0x3b0   :  { %v790_v47 = vmul.f32 %v786_v42, %v711_v22 }
 0x3b1   :  { %v747_v50 = vadd.f32 %v955_v35, %v746_v45  ;;  %v739_v45 = vand.u32 2147483648, %v696_v6 }
 0x3b2   :  { %v810_v51 = vmul.f32 %v957_v48, %v790_v47  ;;  %v385_v56 = vpop.xlane.xlu2 %384  ;;  %v737_v47 = vand.u32 2147483647, %v696_v6 }
 0x3b3   :  { %v751_v53 = vsel %vm750_vm1, %v955_v35, %v747_v50  ;;  %958 = vrcp.f32 %v385_v56 }
 0x3b4   :  { %v814_v58 = vsub.f32 1.0, %v810_v51  ;;  %v756_v59 = vsel %vm753_vm2, %v755_v52, %v751_v53  ;;  %960 = vpow2.f32 %v808_v3  ;;  %v740_v53 = vor.u32 1.1754944e-38, %v739_v45 }
 0x3b5   :  { %v761_v62 = vmul.f32 1.0614054, %v756_v59  ;;  %962 = vrcp.f32 %v696_v6  ;;  %vm738_vm9 = vcmp.eq.f32.partialorder %v737_v47, 8.507059e+37 }
 0x3b6   :  { %v818_v63 = vmul.f32 %v814_v58, %v682_v60  ;;  %964 = vrcp.f32 %v1267_v10 }
 0x3b7   :  { %v765_v40 = vadd.f32 -1.4531521, %v761_v62 }
 0x3b8   :  { %826 = vrot.lane.b32.xlu1 %v818_v63, %s1024_s23 }
 0x3b9   :  { %v769_v1 = vmul.f32 %v765_v40, %v756_v59  ;;  %v959_v5 = vpop.eup %958 }
 0x3ba   :  { %v395_v16 = vmul.f32 %v959_v5, %v1211_v46  ;;  %v410_v17 = vpop.permute.xlu2 %409  ;;  %v961_v22 = vpop.eup %960  ;;  %v685_v46 = vsel %vm681_vm5, 1.0, %v1025_v9 }
 0x3bb   :  { %v773_v2 = vadd.f32 1.4214138, %v769_v1  ;;  %v963_v23 = vpop.eup %962 }
 0x3bc   :  { %v1286_v20 = vmul.f32 %v410_v17, %v395_v16  ;;  %v729_v28 = vmul.f32 %v963_v23, %v696_v6  ;;  %v965_v4 = vpop.eup %964  ;;  %vm734_vm6 = vweird.f32 %v963_v23 }
 0x3bd   :  { %v777_v8 = vmul.f32 %v773_v2, %v756_v59  ;;  %v393_v35 = vmul.f32 %v965_v4, %v1196_v26  ;;  %vm735_vm8 = vmor %vm733_vm7, %vm734_vm6 }
 0x3be   :  { %v423_v25 = vsub.f32 0.0, %v1286_v20  ;;  %v730_v31 = vsub.f32 1.0, %v729_v28  ;;  %v388_v32 = vpop.xlane.xlu1 %387 }
 0x3bf   :  { %v781_v11 = vadd.f32 -0.28449672, %v777_v8  ;;  %v453_v8 = vsub.f32 1.0, %v1093_v7 }
 0x3c0   :  { %v429_v30 = vmul.f32 1.442695, %v423_v25  ;;  %v731_v33 = vmul.f32 %v963_v23, %v730_v31 }
 0x3c1   :  { %v785_v18 = vmul.f32 %v781_v11, %v756_v59 }
 0x3c2   :  { %v382_v34 = vpop.xlane.xlu0 %381  ;;  %v732_v10 = vadd.f32 %v963_v23, %v731_v33 }
 0x3c3   :  { %v789_v19 = vadd.f32 0.2548296, %v785_v18  ;;  %966 = vrcp.f32 %v382_v34  ;;  %v456_v34 = vmul.f32 %v453_v8, %v1286_v20 }
 0x3c4   :  { %968 = vpow2.f32 %v429_v30  ;;  %v736_v52 = vsel %vm735_vm8, %v963_v23, %v732_v10 }
 0x3c5   :  { %v793_v12 = vmul.f32 %v789_v19, %v756_v59  ;;  %970 = vrcp.f32 %v388_v32  ;;  %v741_v54 = vsel %vm738_vm9, %v740_v53, %v736_v52 }
 0x3c6   :  { %v760_v58 = vmul.f32 1.0614054, %v741_v54 }
 0x3c7   :  { %v813_v24 = vmul.f32 %v961_v22, %v793_v12 }
 0x3c8   :  { %v764_v44 = vadd.f32 -1.4531521, %v760_v58 }
 0x3c9   :  { %v817_v27 = vsub.f32 1.0, %v813_v24  ;;  %v967_v13 = vpop.eup %966 }
 0x3ca   :  { %v394_v21 = vmul.f32 %v967_v13, %v1221_v57  ;;  %v969_v37 = vpop.eup %968  ;;  %v768_v11 = vmul.f32 %v764_v44, %v741_v54  ;;  %v684_v44 = vsel %vm680_vm10, 1.0, %v1025_v9 }
 0x3cb   :  { %v821_v29 = vmul.f32 %v817_v27, %v685_v46  ;;  %v435_v48 = vsub.f32 1.0, %v969_v37  ;;  %v971_v59 = vpop.eup %970 }
 0x3cc   :  { %v396_v1 = vmul.f32 %v971_v59, %v1217_v55  ;;  %v772_v12 = vadd.f32 1.4214138, %v768_v11 }
 0x3cd   :  { %832 = vrot.lane.b32.xlu1 %v821_v29, %s1024_s23  ;;  %v439_v57 = vmax.f32 %v435_v48, 1e-06  ;;  %v796_v29 = vsub.f32 0.0, %v1281_v61 }
 0x3ce   :  { %v776_v46 = vmul.f32 %v772_v12, %v741_v54 }
 0x3d5   :  { %v400_v36 = vpop.permute.xlu0 %399 }
 0x3d6   :  { %v417_v41 = vmul.f32 %v400_v36, %v393_v35  ;;  %v405_v42 = vpop.permute.xlu1 %404  ;;  %v780_v35 = vadd.f32 -0.28449672, %v776_v46 }
 0x3d7   :  { %v418_v43 = vmul.f32 %v405_v42, %v394_v21  ;;  %v800_v21 = vmul.f32 %v796_v29, %v1281_v61 }
 0x3d8   :  { %v421_v38 = vsub.f32 0.0, %v417_v41  ;;  %v454_v27 = vmul.f32 %v453_v8, %v417_v41  ;;  %v784_v10 = vmul.f32 %v780_v35, %v741_v54 }
 0x3d9   :  { %v422_v50 = vsub.f32 0.0, %v418_v43  ;;  %v455_v30 = vmul.f32 %v453_v8, %v418_v43  ;;  %v806_v43 = vmul.f32 1.442695, %v800_v21 }
 0x3da   :  { %v425_v51 = vmul.f32 1.442695, %v421_v38  ;;  %v788_v45 = vadd.f32 0.2548296, %v784_v10  ;;  %v481_v38 = vpop.permute.xlu2 %480 }
 0x3db   :  { %v427_v26 = vmul.f32 1.442695, %v422_v50  ;;  %v491_v48 = vsub.f32 %v1093_v7, %v481_v38 }
 0x3dc   :  { %972 = vpow2.f32 %v425_v51  ;;  %v792_v50 = vmul.f32 %v788_v45, %v741_v54 }
 0x3dd   :  { %974 = vpow2.f32 %v427_v26  ;;  %v483_v26 = vpop.permute.xlu0 %482 }
 0x3de   :  { %v1296_v56 = vpop.permute.xlu1 %478  ;;  %976 = vlog2.f32 %v439_v57  ;;  %v1317_v57 = vmul.f32 0.70710677, %v491_v48  ;;  %v492_v39 = vsub.f32 %v1093_v7, %v483_v26 }
 0x3df   :  { %v490_v61 = vsub.f32 %v1093_v7, %v1296_v56 }
 0x3e0   :  { %v897_v54 = vclamps-f32 %v1317_v57, 6.0 }
 0x3e1   :  { %v1319_v59 = vmul.f32 0.70710677, %v490_v61 }
 0x3e2   :  { %v973_v60 = vpop.eup %972  ;;  %vm535_vm9 = vcmp.ge.f32.partialorder %v897_v54, 0.0 }
 0x3e3   :  { %v975_v62 = vpop.eup %974  ;;  %v433_v63 = vsub.f32 1.0, %v973_v60 }
 0x3e4   :  { %v434_v40 = vsub.f32 1.0, %v975_v62  ;;  %v977_v5 = vpop.eup %976 }
 0x3e5   :  { %v437_v0 = vmax.f32 %v433_v63, 1e-06  ;;  %v446_v18 = vmul.f32 0.6931472, %v977_v5  ;;  %v896_v63 = vclamps-f32 %v1319_v59, 6.0 }
 0x3e6   :  { %v438_v2 = vmax.f32 %v434_v40, 1e-06  ;;  %v415_v3 = vpop.permute.xlu1 %414 }
 0x3e7   :  { %978 = vlog2.f32 %v437_v0  ;;  %v420_v6 = vmul.f32 %v415_v3, %v396_v1  ;;  %v451_v55 = vmul.f32 %v446_v18, %v1093_v7  ;;  %v139_v0 = vpop.permute.xlu0 %138  ;;  %v1332_v1 = vand.u32 2147483647, %v897_v54 }
 0x3e8   :  { %980 = vlog2.f32 %v438_v2  ;;  %v1337_v49 = vand.u32 2147483647, %v896_v63 }
 0x3e9   :  { %v424_v16 = vsub.f32 0.0, %v420_v6  ;;  %v1300_v17 = vmul.f32 %v453_v8, %v420_v6  ;;  %v460_v4 = vsub.f32 %v451_v55, %v456_v34 }
 0x3ea   :  { %v546_v5 = vmul.f32 0.3275911, %v1337_v49 }
 0x3eb   :  { %v431_v19 = vmul.f32 1.442695, %v424_v16  ;;  %v468_v41 = vsel %vm315_vm4, %v460_v4, 0.0  ;;  %v1353_v4 = vld [vmem:[%s1402_s0] sm:$0xff]  ;;  %s1027_s0 = smov 100  }
 0x3ec   :  { %v550_v11 = vadd.f32 1.0, %v546_v5 }
 0x3ed   :  { %v979_v22 = vpop.eup %978  ;;  %982 = vpow2.f32 %v431_v19 }
 0x3ee   :  { %v981_v23 = vpop.eup %980  ;;  %v442_v24 = vmul.f32 0.6931472, %v979_v22  ;;  %v135_v62 = vpop.permute.xlu1 %134  ;;  %v565_v35 = vand.u32 2147483648, %v550_v11  ;;  %vm559_vm15 = vweird.f32 %v550_v11 }
 0x3ef   :  { %v444_v25 = vmul.f32 0.6931472, %v981_v23  ;;  %v137_v40 = vadd.f32 %v135_v62, %v1243_v15  ;;  %v1341_v15 = vmul.f32 0.70710677, %v492_v39  ;;  %v117_v23 = vpop.permute.xlu2 %116 }
 0x3f0   :  { %v449_v28 = vmul.f32 %v442_v24, %v1093_v7  ;;  %v566_v10 = vor.u32 1.1754944e-38, %v565_v35 }
 0x3f1   :  { %v450_v31 = vmul.f32 %v444_v25, %v1093_v7  ;;  %v141_v3 = vmul.f32 %v139_v0, %v137_v40  ;;  %v898_v8 = vclamps-f32 %v1341_v15, 6.0 }
 0x3f2   :  { %v458_v32 = vsub.f32 %v449_v28, %v454_v27 }
 0x3f3   :  { %v459_v13 = vsub.f32 %v450_v31, %v455_v30  ;;  %v983_v36 = vpop.eup %982 }
 0x3f4   :  { %v462_v33 = vsel %vm315_vm4, %v458_v32, 0.0  ;;  %v436_v37 = vsub.f32 1.0, %v983_v36  ;;  %v563_v36 = vand.u32 2147483647, %v550_v11 }
 0x3f5   :  { %463 = vadd.xlane.f32.xlu0 %v462_v33  ;;  %v465_v20 = vsel %vm315_vm4, %v459_v13, 0.0 }
 0x3f6   :  { %466 = vadd.xlane.f32.xlu2 %v465_v20  ;;  %v440_v42 = vmax.f32 %v436_v37, 1e-06  ;;  %vm564_vm2 = vcmp.eq.f32.partialorder %v563_v36, 8.507059e+37 }
 0x3f7   :  { %469 = vadd.xlane.f32.xlu1 %v468_v41  ;;  %v485_v46 = vpop.permute.xlu2 %484 }
 0x3f8   :  { %984 = vlog2.f32 %v440_v42  ;;  %v493_v13 = vsub.f32 %v1353_v4, %v485_v46 }
 0x3f9   :  { %986 = vpow2.f32 %v806_v43 }
 0x3fa   :  { %v1356_v42 = vmul.f32 0.70710677, %v493_v13 }
 0x3fc   :  { %v899_v48 = vclamps-f32 %v1356_v42, 6.0 }
 0x3fe   :  { %v985_v47 = vpop.eup %984 }
 0x3ff   :  { %v448_v51 = vmul.f32 0.6931472, %v985_v47  ;;  %v987_v52 = vpop.eup %986 }
 0x400   :  { %v812_v58 = vmul.f32 %v987_v52, %v792_v50  ;;  %v1365_v52 = vand.u32 2147483647, %v899_v48 }
 0x401   :  { %v1315_v53 = vmul.f32 %v448_v51, %v1093_v7  ;;  %v1347_v7 = vand.u32 2147483647, %v898_v8 }
 0x402   :  { %v816_v56 = vsub.f32 1.0, %v812_v58 }
 0x403   :  { %v461_v60 = vsub.f32 %v1315_v53, %v1300_v17  ;;  %v548_v16 = vmul.f32 0.3275911, %v1347_v7  ;;  %v120_v17 = vsel %vm119_vm3, %v117_v23, 0.0 }
 0x404   :  { %v820_v2 = vmul.f32 %v816_v56, %v684_v44 }
 0x405   :  { %v552_v22 = vadd.f32 1.0, %v548_v16  ;;  %v471_v38 = vsel %vm315_vm4, %v461_v60, 0.0  ;;  %v549_v60 = vmul.f32 0.3275911, %v1365_v52 }
 0x407   :  { %v595_v58 = vand.u32 2147483648, %v552_v22  ;;  %vm589_vm6 = vweird.f32 %v552_v22  ;;  %v593_v56 = vand.u32 2147483647, %v552_v22  ;;  %v553_v39 = vadd.f32 1.0, %v549_v60 }
 0x409   :  { %124 = vrot.lane.b32.xlu0 %v1239_v14, %s1026_s24  ;;  %v547_v14 = vmul.f32 0.3275911, %v1332_v1  ;;  %v596_v44 = vor.u32 1.1754944e-38, %v595_v58  ;;  %vm594_vm4 = vcmp.eq.f32.partialorder %v593_v56, 8.507059e+37  ;;  %vm604_vm8 = vweird.f32 %v553_v39 }
 0x40b   :  { %v551_v6 = vadd.f32 1.0, %v547_v14 }
 0x40d   :  { %988 = vrcp.f32 %v551_v6  ;;  %v580_v31 = vand.u32 2147483648, %v551_v6  ;;  %vm574_vm13 = vweird.f32 %v551_v6  ;;  %v578_v33 = vand.u32 2147483647, %v551_v6 }
 0x40e   :  { %830 = vrot.lane.b32.xlu2 %v820_v2, %s1024_s23  ;;  %990 = vrcp.f32 %v550_v11 }
 0x40f   :  { %992 = vrcp.f32 %v552_v22  ;;  %v581_v37 = vor.u32 1.1754944e-38, %v580_v31  ;;  %vm579_vm1 = vcmp.eq.f32.partialorder %v578_v33, 8.507059e+37 }
 0x410   :  { %143 = vrot.lane.b32.xlu1 %v141_v3, %s1026_s24  ;;  %994 = vrcp.f32 %v553_v39  ;;  %v829_v56 = vpop.permute.xlu0 %828 }
 0x413   :  { %v989_v18 = vpop.eup %988 }
 0x414   :  { %v991_v19 = vpop.eup %990  ;;  %v570_v12 = vmul.f32 %v989_v18, %v551_v6  ;;  %vm575_vm11 = vweird.f32 %v989_v18 }
 0x415   :  { %v555_v24 = vmul.f32 %v991_v19, %v550_v11  ;;  %v993_v28 = vpop.eup %992  ;;  %vm560_vm12 = vweird.f32 %v991_v19  ;;  %vm576_vm14 = vmor %vm574_vm13, %vm575_vm11  ;;  %v651_v11 = vsub.f32 0.0, %v1332_v1  ;;  %vm534_vm11 = vcmp.ge.f32.partialorder %v896_v63, 0.0 }
 0x416   :  { %v571_v55 = vsub.f32 1.0, %v570_v12  ;;  %v585_v30 = vmul.f32 %v993_v28, %v552_v22  ;;  %vm561_vm0 = vmor %vm559_vm15, %vm560_vm12  ;;  %vm590_vm5 = vweird.f32 %v993_v28  ;;  %v538_v60 = vsel %vm534_vm11, 1.0, %v1025_v9 }
 0x417   :  { %v556_v25 = vsub.f32 1.0, %v555_v24  ;;  %vm591_vm7 = vmor %vm589_vm6, %vm590_vm5  ;;  %v655_v22 = vmul.f32 %v651_v11, %v1332_v1  ;;  %v652_v1 = vsub.f32 0.0, %v1347_v7  ;;  %vm536_vm13 = vcmp.ge.f32.partialorder %v898_v8, 0.0 }
 0x418   :  { %v572_v34 = vmul.f32 %v989_v18, %v571_v55  ;;  %v586_v20 = vsub.f32 1.0, %v585_v30  ;;  %v995_v55 = vpop.eup %994  ;;  %vm874_vm15 = vcmask 7168  }
 0x419   :  { %v557_v27 = vmul.f32 %v991_v19, %v556_v25  ;;  %vm605_vm3 = vweird.f32 %v995_v55 }
 0x41a   :  { %v573_v29 = vadd.f32 %v989_v18, %v572_v34  ;;  %v587_v47 = vmul.f32 %v993_v28, %v586_v20  ;;  %vm606_vm10 = vmor %vm604_vm8, %vm605_vm3 }
 0x41b   :  { %v558_v32 = vadd.f32 %v991_v19, %v557_v27  ;;  %v660_v27 = vmul.f32 1.442695, %v655_v22  ;;  %v540_v22 = vsel %vm536_vm13, 1.0, %v1025_v9 }
 0x41c   :  { %v577_v21 = vsel %vm576_vm14, %v989_v18, %v573_v29  ;;  %v588_v51 = vadd.f32 %v993_v28, %v587_v47  ;;  %vm537_vm14 = vcmp.ge.f32.partialorder %v899_v48, 0.0 }
 0x41d   :  { %v562_v41 = vsel %vm561_vm0, %v991_v19, %v558_v32  ;;  %v582_v43 = vsel %vm579_vm1, %v581_v37, %v577_v21  ;;  %v650_v19 = vsub.f32 0.0, %v1337_v49  ;;  %996 = vpow2.f32 %v660_v27 }
 0x41e   :  { %v567_v45 = vsel %vm564_vm2, %v566_v10, %v562_v41  ;;  %v615_v50 = vmul.f32 1.0614054, %v582_v43  ;;  %v592_v53 = vsel %vm591_vm7, %v993_v28, %v588_v51  ;;  %v600_v28 = vmul.f32 %v995_v55, %v553_v39 }
 0x41f   :  { %v614_v61 = vmul.f32 1.0614054, %v567_v45  ;;  %v1369_v2 = vsel %vm594_vm4, %v596_v44, %v592_v53  ;;  %v654_v25 = vmul.f32 %v650_v19, %v1337_v49  ;;  %v656_v49 = vmul.f32 %v652_v1, %v1347_v7 }
 0x420   :  { %v619_v26 = vadd.f32 -1.4531521, %v615_v50  ;;  %v616_v5 = vmul.f32 1.0614054, %v1369_v2  ;;  %v601_v32 = vsub.f32 1.0, %v600_v28  ;;  %v610_v51 = vand.u32 2147483648, %v553_v39 }
 0x421   :  { %v618_v62 = vadd.f32 -1.4531521, %v614_v61  ;;  %v658_v30 = vmul.f32 1.442695, %v654_v25  ;;  %v662_v61 = vmul.f32 1.442695, %v656_v49 }
 0x422   :  { %v623_v40 = vmul.f32 %v619_v26, %v582_v43  ;;  %v620_v18 = vadd.f32 -1.4531521, %v616_v5  ;;  %v602_v21 = vmul.f32 %v995_v55, %v601_v32  ;;  %v608_v26 = vand.u32 2147483647, %v553_v39 }
 0x423   :  { %v622_v0 = vmul.f32 %v618_v62, %v567_v45  ;;  %998 = vpow2.f32 %v658_v30  ;;  %v997_v37 = vpop.eup %996  ;;  %v611_v62 = vor.u32 1.1754944e-38, %v610_v51  ;;  %v541_v51 = vsel %vm537_vm14, 1.0, %v1025_v9 }
 0x424   :  { %v627_v3 = vadd.f32 1.4214138, %v623_v40  ;;  %v624_v24 = vmul.f32 %v620_v18, %v1369_v2  ;;  %v603_v47 = vadd.f32 %v995_v55, %v602_v21  ;;  %1000 = vpow2.f32 %v662_v61 }
 0x425   :  { %v626_v14 = vadd.f32 1.4214138, %v622_v0  ;;  %vm609_vm12 = vcmp.eq.f32.partialorder %v608_v26, 8.507059e+37  ;;  %vm876_vm0 = vcmask 15360  }
 0x426   :  { %v631_v6 = vmul.f32 %v627_v3, %v582_v43  ;;  %v628_v29 = vadd.f32 1.4214138, %v624_v24 }
 0x427   :  { %v630_v16 = vmul.f32 %v626_v14, %v567_v45 }
 0x428   :  { %v635_v12 = vadd.f32 -0.28449672, %v631_v6  ;;  %v632_v33 = vmul.f32 %v628_v29, %v1369_v2 }
 0x429   :  { %v634_v23 = vadd.f32 -0.28449672, %v630_v16  ;;  %v999_v41 = vpop.eup %998 }
 0x42a   :  { %v639_v34 = vmul.f32 %v635_v12, %v582_v43  ;;  %v636_v20 = vadd.f32 -0.28449672, %v632_v33  ;;  %v827_v40 = vpop.permute.xlu1 %826  ;;  %v1001_v39 = vpop.eup %1000 }
 0x42b   :  { %v638_v46 = vmul.f32 %v634_v23, %v567_v45 }
 0x42c   :  { %v643_v31 = vadd.f32 0.2548296, %v639_v34  ;;  %v640_v50 = vmul.f32 %v636_v20, %v1369_v2 }
 0x42d   :  { %v642_v13 = vadd.f32 0.2548296, %v638_v46  ;;  %v653_v46 = vsub.f32 0.0, %v1365_v52 }
 0x42e   :  { %v647_v35 = vmul.f32 %v643_v31, %v582_v43  ;;  %v644_v58 = vadd.f32 0.2548296, %v640_v50 }
 0x42f   :  { %v646_v36 = vmul.f32 %v642_v13, %v567_v45  ;;  %v607_v45 = vsel %vm606_vm10, %v995_v55, %v603_v47  ;;  %v657_v31 = vmul.f32 %v653_v46, %v1365_v52 }
 0x430   :  { %v667_v10 = vmul.f32 %v997_v37, %v647_v35  ;;  %v612_v57 = vsel %vm609_vm12, %v611_v62, %v607_v45  ;;  %v648_v44 = vmul.f32 %v644_v58, %v1369_v2 }
 0x431   :  { %v617_v63 = vmul.f32 1.0614054, %v612_v57  ;;  %v664_v21 = vmul.f32 1.442695, %v657_v31 }
 0x432   :  { %v671_v43 = vsub.f32 1.0, %v667_v10  ;;  %v668_v3 = vmul.f32 %v1001_v39, %v648_v44 }
 0x433   :  { %v621_v11 = vadd.f32 -1.4531521, %v617_v63 }
 0x434   :  { %v672_v16 = vsub.f32 1.0, %v668_v3 }
 0x435   :  { %v625_v12 = vmul.f32 %v621_v11, %v612_v57 }
 0x436   :  { %v676_v23 = vmul.f32 %v672_v16, %v540_v22 }
 0x437   :  { %472 = vadd.xlane.f32.xlu2 %v471_v38  ;;  %v666_v38 = vmul.f32 %v999_v41, %v646_v36  ;;  %v629_v24 = vadd.f32 1.4214138, %v625_v12 }
 0x439   :  { %v670_v7 = vsub.f32 1.0, %v666_v38  ;;  %v633_v34 = vmul.f32 %v629_v24, %v612_v57 }
 0x43b   :  { %v674_v54 = vmul.f32 %v670_v7, %v538_v60  ;;  %v637_v29 = vadd.f32 -0.28449672, %v633_v34 }
 0x43d   :  { %v838_v59 = vsub.f32 %v674_v54, %v827_v40  ;;  %v641_v36 = vmul.f32 %v637_v29, %v612_v57 }
 0x43f   :  { %121 = vadd.xlane.f32.xlu2 %v120_v17  ;;  %v539_v17 = vsel %vm535_vm9, 1.0, %v1025_v9  ;;  %v842_v6 = vmul.f32 0.5, %v838_v59  ;;  %v833_v8 = vpop.permute.xlu1 %832  ;;  %v645_v10 = vadd.f32 0.2548296, %v641_v36 }
 0x440   :  { %v675_v53 = vmul.f32 %v671_v43, %v539_v17 }
 0x441   :  { %v846_v19 = vmax.f32 %v842_v6, 1e-12  ;;  %v649_v47 = vmul.f32 %v645_v10, %v612_v57 }
 0x442   :  { %v839_v0 = vsub.f32 %v675_v53, %v829_v56 }
 0x444   :  { %v843_v14 = vmul.f32 0.5, %v839_v0 }
 0x446   :  { %v847_v18 = vmax.f32 %v843_v14, 1e-12 }
 0x448   :  { %1002 = vlog2.f32 %v847_v18 }
 0x449   :  { %1004 = vlog2.f32 %v846_v19 }
 0x44e   :  { %v1003_v28 = vpop.eup %1002 }
 0x44f   :  { %v1005_v15 = vpop.eup %1004  ;;  %v853_v13 = vmul.f32 0.6931472, %v1003_v28 }
 0x450   :  { %v851_v32 = vmul.f32 0.6931472, %v1005_v15 }
 0x468   :  { %v464_v30 = vpop.xlane.xlu0 %463 }
 0x469   :  { %v467_v5 = vpop.xlane.xlu2 %466  ;;  %v858_v33 = vadd.f32 %v851_v32, %v464_v30 }
 0x46a   :  { %v859_v1 = vadd.f32 %v853_v13, %v467_v5  ;;  %v470_v49 = vpop.xlane.xlu1 %469 }
 0x46c   :  { %v862_v37 = vadd.f32 %v859_v1, %v858_v33 }
 0x471   :  { %v831_v2 = vpop.permute.xlu2 %830 }
 0x472   :  { %v840_v55 = vsub.f32 %v676_v23, %v831_v2 }
 0x474   :  { %v844_v25 = vmul.f32 0.5, %v840_v55 }
 0x476   :  { %v848_v27 = vmax.f32 %v844_v25, 1e-12 }
 0x478   :  { %1006 = vlog2.f32 %v848_v27 }
 0x479   :  { %1008 = vpow2.f32 %v664_v21 }
 0x47b   :  { %v125_v62 = vpop.permute.xlu0 %124 }
 0x47c   :  { %v127_v60 = vsub.f32 %v1353_v4, %v125_v62 }
 0x47e   :  { %v1007_v35 = vpop.eup %1006 }
 0x47f   :  { %v855_v20 = vmul.f32 0.6931472, %v1007_v35  ;;  %v1009_v50 = vpop.eup %1008 }
 0x480   :  { %v669_v61 = vmul.f32 %v1009_v50, %v649_v47 }
 0x481   :  { %v860_v41 = vadd.f32 %v855_v20, %v470_v49 }
 0x482   :  { %v673_v52 = vsub.f32 1.0, %v669_v61  ;;  %v144_v17 = vpop.permute.xlu1 %143 }
 0x483   :  { %v863_v38 = vadd.f32 %v862_v37, %v860_v41  ;;  %v146_v57 = vadd.f32 %v144_v17, %v127_v60 }
 0x484   :  { %v677_v26 = vmul.f32 %v673_v52, %v541_v51 }
 0x485   :  { %v886_v48 = vadd.f32 -0.5, %v146_v57 }
 0x486   :  { %v841_v43 = vsub.f32 %v677_v26, %v833_v8 }
 0x488   :  { %v845_v7 = vmul.f32 0.5, %v841_v43 }
 0x48a   :  { %v849_v45 = vmax.f32 %v845_v7, 1e-12 }
 0x48c   :  { %1010 = vlog2.f32 %v849_v45 }
 0x492   :  { %v1011_v58 = vpop.eup %1010 }
 0x493   :  { %v857_v56 = vmul.f32 0.6931472, %v1011_v58 }
 0x4aa   :  { %v473_v53 = vpop.xlane.xlu2 %472 }
 0x4ab   :  { %v861_v40 = vadd.f32 %v857_v56, %v473_v53 }
 0x4ad   :  { %v864_v54 = vadd.f32 %v863_v38, %v861_v40 }
 0x4af   :  { %v865_v42 = vmul.f32 0.25, %v864_v54 }
 0x4b1   :  { %867 = vrot.lane.b32.xlu2 %v865_v42, %s1027_s0 }
 0x4b2   :  { %v122_v9 = vpop.xlane.xlu2 %121 }
 0x4b3   :  { %v148_v44 = vadd.f32 %v886_v48, %v122_v9 }
 0x4b5   :  { %871 = vrot.lane.b32.xlu0 %v148_v44, %s1028_s27 }
 0x50b   :  { %v868_v0 = vpop.permute.xlu2 %867 }
 0x527   :  { %v872_v59 = vpop.permute.xlu0 %871 }
 0x528   :  { %v875_v63 = vsel %vm874_vm15, %v868_v0, %v872_v59 }
 0x529   :  { %v877_v39 = vsel %vm876_vm0, %v875_v63, 0.0 }
 0x52a   :  { %878 = vst [vmem:[%s1407_s7] sm:$0xff] %v877_v39 }

</bundles_post_ra>
